<compile_context>
chip_gen: v5e
topology: v5e:2x2
jax: 0.10.0
libtpu: 0.0.40
codegen_flags: <defaults>
</compile_context>

<pallas_src>
import numpy as np
import jax
import jax.numpy as jnp
from jax import lax
from jax.experimental import pallas as pl
from jax.experimental.pallas import tpu as pltpu


def _round_up(a: int, m: int) -> int:
    return (a + m - 1) // m * m


def _make_kernel(w, chunk_in, chunk_out, n_full, tail_in, tail_out,
                 precision, acc_dtype):
    """Bakes all static layout parameters into the kernel body."""

    def _sel_dot(a, sel):
        return lax.dot_general(
            a, sel,
            dimension_numbers=(((1,), (0,)), ((), ())),
            precision=precision,
            preferred_element_type=acc_dtype)

    def kernel(x_ref, sel_ref, o_ref):
        x = x_ref[...]                                    # (bm, 2*k*w)
        # Vertical 2:1 max: the bottom row of each pair sits w lanes to the right.
        v = jnp.maximum(x, jnp.roll(x, -w, axis=1))
        # Horizontal pair max: the right neighbour is 1 lane to the right.
        m = jnp.maximum(v, jnp.roll(v, -1, axis=1))
        sel = sel_ref[...]
        # Stride-2 compaction + dense repack via a 0/1 selection matmul (MXU).
        for c in range(n_full):
            blk = m[:, c * chunk_in:(c + 1) * chunk_in]
            o_ref[:, c * chunk_out:(c + 1) * chunk_out] = (
                _sel_dot(blk, sel).astype(o_ref.dtype))
        if tail_in:
            blk = m[:, n_full * chunk_in:n_full * chunk_in + tail_in]
            o_ref[:, n_full * chunk_out:n_full * chunk_out + tail_out] = (
                _sel_dot(blk, sel[:tail_in, :tail_out]).astype(o_ref.dtype))

    return kernel


@jax.jit
def maxpool_forward(seqs, views=None):
    """Forward pass of the `maxpool` module; `views` is unused (as in PyTorch)."""
    del views
    n, c, s, h, w = seqs.shape
    orig_dtype = seqs.dtype
    hh, wh = h // 2, w // 2
    if hh == 0 or wh == 0:
        return jnp.zeros((n, c, s, hh, wh), dtype=orig_dtype)

    if not jnp.issubdtype(orig_dtype, jnp.floating):
        seqs = seqs.astype(jnp.float32)       # exact for integer features < 2**24
    dtype = seqs.dtype
    itemsize = jnp.dtype(dtype).itemsize

    if h % 2 or w % 2:
        # TODO(synk): if odd H/W were common, mask the last row/col in-kernel
        # instead of paying this extra HBM copy (MaxPool2d(2,2) floors odd dims).
        seqs = seqs[:, :, :, : 2 * hh, : 2 * wh]
        h, w = 2 * hh, 2 * wh

    B = n * c * s
    npairs = B * hh                           # independent window-row pairs

    # ---- lane-dense packing: k row-pairs per kernel row ----------------------
    max_inner = 512                           # cap on the selection-matmul inner dim
    k_cap = max(1, max_inner // (2 * w))
    k = 1
    for cand in range(min(k_cap, npairs), 0, -1):
        if npairs % cand == 0:
            k = cand
            break
    R = npairs // k
    lin = 2 * k * w                           # input lanes per kernel row
    lout = k * wh                             # output lanes per kernel row

    # ---- compaction plan ------------------------------------------------------
    if lin <= max_inner:
        # one selection matmul per block: kron(I_k, even-lane-select) pattern
        chunk_in, chunk_out, n_full, tail_in, tail_out = lin, lout, 1, 0, 0
        sel_np = np.zeros((lin, lout), dtype=np.float32)
        q = np.arange(k)[:, None]
        t = np.arange(wh)[None, :]
        sel_np[(2 * q * w + 2 * t).ravel(), (q * wh + t).ravel()] = 1.0
    else:
        # wide images (k == 1): shared even-lane selection per 256-lane chunk
        chunk_in, chunk_out = 256, 128
        n_full, rem = w // chunk_in, w % chunk_in
        tail_in, tail_out = rem, rem // 2
        sel_np = np.zeros((chunk_in, chunk_out), dtype=np.float32)
        sel_np[2 * np.arange(chunk_out), np.arange(chunk_out)] = 1.0
    sel = jnp.asarray(sel_np, dtype=dtype)
    # f32 needs full-precision MXU passes so selection-by-1.0 stays exact.
    precision = lax.Precision.HIGHEST if itemsize >= 4 else None

    x = seqs.reshape(R, lin)                  # contiguous -> free view

    # ---- generation-aware block sizing ----------------------------------------
    try:
        vmem_cap = int(pltpu.get_tpu_info().vmem_capacity_bytes)
    except Exception:                         # CPU / interpret mode / older jax
        vmem_cap = 64 * 1024 * 1024
    vmem_limit = int(min(96 << 20, max(32 << 20, vmem_cap // 2)))

    quantum = 8 * max(1, 4 // itemsize)       # sublane quantum: 8 f32 / 16 bf16
    in_row = _round_up(lin, 128) * itemsize
    out_row = _round_up(lout, 128) * itemsize
    acc_row = _round_up(lout, 128) * 4        # f32 matmul accumulator tile
    # 2x pipeline buffers per operand + ~3 live block-sized temporaries (rolls/maxes)
    row_cost = 6 * in_row + 2 * out_row + acc_row
    sel_bytes = int(sel_np.size) * itemsize
    budget = vmem_limit - (2 << 20) - sel_bytes
    bm_vmem = max(quantum, budget // row_cost // quantum * quantum)
    bm_floor = _round_up(max(1, (1 << 20) // (in_row + out_row)), quantum)  # >=~1 MiB/step
    bm_steps = _round_up(pl.cdiv(R, 8), quantum)                            # aim for >=8 steps
    bm = min(bm_vmem, max(bm_floor, bm_steps))
    if bm >= R:
        bm = R                                # full extent is always a legal block
    steps = pl.cdiv(R, bm)

    kernel = _make_kernel(w, chunk_in, chunk_out, n_full, tail_in, tail_out,
                          precision, jnp.float32)

    cost = pl.CostEstimate(
        flops=3 * B * hh * wh
        + 2 * R * (n_full * chunk_in * chunk_out + tail_in * tail_out),
        transcendentals=0,
        bytes_accessed=(R * lin + R * lout) * itemsize + sel_bytes,
    )

    out = pl.pallas_call(
        kernel,
        out_shape=jax.ShapeDtypeStruct((R, lout), dtype),
        grid=(steps,),
        in_specs=[
            pl.BlockSpec((bm, lin), lambda i: (i, 0)),
            pl.BlockSpec(sel.shape, lambda i: (0, 0)),   # resident: same block every step
        ],
        out_specs=pl.BlockSpec((bm, lout), lambda i: (i, 0)),
        compiler_params=pltpu.CompilerParams(
            dimension_semantics=("parallel",),
            vmem_limit_bytes=vmem_limit,
        ),
        cost_estimate=cost,
    )(x, sel)

    out = out.reshape(n, c, s, hh, wh)        # contiguous -> free view
    return out.astype(orig_dtype)


def _reference(seqs):
    n, c, s, h, w = seqs.shape
    xr = seqs.reshape(n, c, s, h // 2, 2, w // 2, 2)
    return jnp.max(xr, axis=(4, 6))


if __name__ == "__main__":
    key = jax.random.PRNGKey(0)
    n, c, s, h, w = 2, 3, 4, 16, 16
    k_seqs, k_views = jax.random.split(key)
    seqs = jax.random.normal(k_seqs, (n, c, s, h, w), dtype=jnp.float32)
    views = jax.random.normal(k_views, (n, c, 8), dtype=jnp.float32)  # unused, as in PyTorch

    out = maxpool_forward(seqs, views)
    out = jax.block_until_ready(out)

    assert out.shape == (n, c, s, h // 2, w // 2), out.shape
    ref = _reference(seqs)
    assert jnp.allclose(out, ref, rtol=1e-6, atol=1e-6), "mismatch vs reference max-pool"

    print("KERNEL_OK")
</pallas_src>

<mosaic_0001>
module attributes {stable_mosaic.version = 11 : i64} {
  func.func @kernel(%arg0: i32, %arg1: memref<12x512xf32, #tpu.memory_space<vmem>>, %arg2: memref<512x128xf32, #tpu.memory_space<vmem>>, %arg3: memref<12x128xf32, #tpu.memory_space<vmem>>) attributes {dimension_semantics = [#tpu.dimension_semantics<parallel>], iteration_bounds = array<i64: 1>, scalar_prefetch = 0 : i64, scratch_operands = 0 : i64, tpu.core_type = #tpu.core_type<tc>, window_params = [{transform_indices = @transform_0, window_bounds = array<i64: 12, 512>}, {pipeline_mode = #tpu.pipeline_mode<synchronous>, transform_indices = @transform_1, window_bounds = array<i64: 512, 128>}, {transform_indices = @transform_2, window_bounds = array<i64: 12, 128>}]} {
    %c0 = arith.constant 0 : index
    %c0_0 = arith.constant 0 : index
    %0 = vector.load %arg1[%c0, %c0_0] : memref<12x512xf32, #tpu.memory_space<vmem>>, vector<12x512xf32>
    %1 = vector.extract_strided_slice %0 {offsets = [0, 16], sizes = [12, 496], strides = [1, 1]} : vector<12x512xf32> to vector<12x496xf32>
    %2 = vector.extract_strided_slice %0 {offsets = [0, 0], sizes = [12, 16], strides = [1, 1]} : vector<12x512xf32> to vector<12x16xf32>
    %3 = tpu.concatenate %1, %2 in 1 : vector<12x496xf32>, vector<12x16xf32> -> vector<12x512xf32>
    %4 = arith.maximumf %0, %3 : vector<12x512xf32>
    %5 = vector.extract_strided_slice %4 {offsets = [0, 1], sizes = [12, 511], strides = [1, 1]} : vector<12x512xf32> to vector<12x511xf32>
    %6 = vector.extract_strided_slice %4 {offsets = [0, 0], sizes = [12, 1], strides = [1, 1]} : vector<12x512xf32> to vector<12x1xf32>
    %7 = tpu.concatenate %5, %6 in 1 : vector<12x511xf32>, vector<12x1xf32> -> vector<12x512xf32>
    %8 = arith.maximumf %4, %7 : vector<12x512xf32>
    %c0_1 = arith.constant 0 : index
    %c0_2 = arith.constant 0 : index
    %9 = vector.load %arg2[%c0_1, %c0_2] : memref<512x128xf32, #tpu.memory_space<vmem>>, vector<512x128xf32>
    %cst = arith.constant dense<0.000000e+00> : vector<12x128xf32>
    %10 = tpu.matmul %8, %9, %cst {dimension_numbers = #tpu.dot_dimension_numbers<[1], [0], [0], [1], [0, 0, 1, 1], [], []>, precision = #tpu.contract_precision<fp32>} : vector<12x512xf32>, vector<512x128xf32>, vector<12x128xf32> -> vector<12x128xf32>
    %c0_3 = arith.constant 0 : index
    %c0_4 = arith.constant 0 : index
    %11 = vector.load %arg3[%c0_3, %c0_4] : memref<12x128xf32, #tpu.memory_space<vmem>>, vector<12x128xf32>
    tpu.vector_store %arg3[%c0_3, %c0_4], %10 {strides = array<i32>} : memref<12x128xf32, #tpu.memory_space<vmem>>, vector<12x128xf32>,
    return
  }
  func.func @transform_0(%arg0: i32) -> (i32, i32) {
    %c0_i32 = arith.constant 0 : i32
    %c0_i32_0 = arith.constant 0 : i32
    return %arg0, %c0_i32 : i32, i32
  }
  func.func @transform_1(%arg0: i32) -> (i32, i32) {
    %c0_i32 = arith.constant 0 : i32
    %c0_i32_0 = arith.constant 0 : i32
    %c0_i32_1 = arith.constant 0 : i32
    return %c0_i32, %c0_i32_0 : i32, i32
  }
  func.func @transform_2(%arg0: i32) -> (i32, i32) {
    %c0_i32 = arith.constant 0 : i32
    %c0_i32_0 = arith.constant 0 : i32
    return %arg0, %c0_i32 : i32, i32
  }
}

</mosaic_0001>

<bundles_post_ra>
// kernel: maxpool_forward.1
= control target key start
LH: loop header
LB: loop body
LE: loop exit
PB: predicated region body
PF: predicated region fallthrough
CT: control target
= control target key end

     0   :  { %7 = vsyncpa [#allocation3], 0  ;;  %s1727_s12 = smov [#allocation2]   ;;  %s1728_s14 = smov 128   ;;  %s2956_s0 = inlined_call_operand.vmem [shape: f32[12,512], index: 0, kind: input, shape index: {}]   ;;  %s2957_s1 = inlined_call_operand.hbm [shape: f32[512,128], index: 1, kind: input, shape index: {}]   ;;  %s2958_s2 = inlined_call_operand.vmem [shape: f32[12,128], index: 2, kind: output, shape index: {}]  }
   0x1   :  { %s14_s11 = sshll.u32 %s2957_s1, 4  ;;  %s16_s13 = sshll.u32 %s1727_s12, 4  ;;  %s15_s11 = int_to_ptr.hbm [resolvable:$true] %s14_s11  ;;  %s17_s13 = int_to_ptr.vmem [resolvable:$true] %s16_s13 }
   0x2   :  { %s1729_s15 = smov 8  }
   0x3   :  { %22 = dma.hbm_to_vmem [thread:$0]  %s15_s11, 8192, %s17_s13, [#allocation3], %s1728_s14, %s1728_s14, %s1729_s15  }
   0x4   :  { %1725 = dma.done.wait [#allocation3], 8192  }
   0x5   :  { %1726 = vsyncadd [#allocation3], 4294959104  ;;  %v1753_v0 = vld [vmem:[%s2956_s0 + $0x10] sm:$0xff]  ;;  %v1758_v1 = vld [vmem:[%s2956_s0] sm:$0xff]  ;;  %s1730_s1 = smov 112   ;;  %vm59_vm0 = vcmask 916480  }
   0x6   :  { %47 = vrot.lane.b32.xlu1 %v1753_v0, %s1730_s1  ;;  %43 = vrot.lane.b32.xlu0 %v1758_v1, %s1730_s1  ;;  %v1765_v2 = vld [vmem:[%s2956_s0 + $0x28] sm:$0xf]  ;;  %v1771_v3 = vld [vmem:[%s2956_s0 + $0x20] sm:$0xf]  ;;  %v152_v8 = vld [vmem:[#allocation2 + $0x78] sm:$0xff]  ;;  %vm110_vm1 = vcmask 1039360  }
   0x7   :  { %53 = vrot.lane.b32.xlu2 %v1765_v2, %s1730_s1  ;;  %v1776_v4 = vld [vmem:[%s2956_s0 + $0x8] sm:$0xff]  ;;  %v1781_v5 = vld [vmem:[%s2956_s0 + $0x30] sm:$0xf]  ;;  %v1789_v6 = vld [vmem:[%s2956_s0 + $0x38] sm:$0xf]  ;;  %v1798_v11 = vand.u32 4294901760, %v152_v8 }
   0x8   :  { %v1794_v7 = vld [vmem:[%s2956_s0 + $0x18] sm:$0xff]  ;;  %v151_v9 = vld [vmem:[#allocation2 + $0x70] sm:$0xff]  ;;  %v150_v10 = vld [vmem:[#allocation2 + $0x68] sm:$0xff]  ;;  %s1731_s0 = smov 127  }
   0x9   :  { %v1800_v12 = vand.u32 4294901760, %v151_v9  ;;  %v1802_v13 = vand.u32 4294901760, %v150_v10  ;;  %v149_v14 = vld [vmem:[#allocation2 + $0x60] sm:$0xff]  ;;  %v148_v15 = vld [vmem:[#allocation2 + $0x58] sm:$0xff]  ;;  %v147_v16 = vld [vmem:[#allocation2 + $0x50] sm:$0xff]  ;;  %v1817_v25 = vsub.f32 %v152_v8, %v1798_v11  ;;  %415 = vmatpush.msra.mxu3 %v1798_v11  ;;  %202 = vmatpush.msra.mxu0 %v1798_v11 }
   0xa   :  { %v1806_v18 = vand.u32 4294901760, %v149_v14  ;;  %v1808_v19 = vand.u32 4294901760, %v148_v15  ;;  %v1810_v20 = vand.u32 4294901760, %v147_v16  ;;  %v146_v21 = vld [vmem:[#allocation2 + $0x48] sm:$0xff]  ;;  %v145_v22 = vld [vmem:[#allocation2 + $0x40] sm:$0xff]  ;;  %v144_v43 = vld [vmem:[#allocation2 + $0x38] sm:$0xff] }
   0xb   :  { %v1820_v26 = vsub.f32 %v151_v9, %v1800_v12  ;;  %v1823_v27 = vsub.f32 %v150_v10, %v1802_v13  ;;  %v1827_v28 = vand.u32 4294901760, %v146_v21  ;;  %v252_v32 = vand.u32 4294901760, %v1817_v25  ;;  %357 = vmatpush.msra.mxu2 %v1817_v25  ;;  %417 = vmatpush.msra.mxu3 %v1800_v12  ;;  %v143_v44 = vld [vmem:[#allocation2 + $0x30] sm:$0xff]  ;;  %v142_v45 = vld [vmem:[#allocation2 + $0x28] sm:$0xff]  ;;  %v141_v58 = vld [vmem:[#allocation2 + $0x20] sm:$0xff] }
   0xc   :  { %v1830_v29 = vsub.f32 %v149_v14, %v1806_v18  ;;  %v1833_v30 = vsub.f32 %v148_v15, %v1808_v19  ;;  %v1836_v31 = vsub.f32 %v147_v16, %v1810_v20  ;;  %v1843_v35 = vand.u32 4294901760, %v145_v22  ;;  %204 = vmatpush.msra.mxu0 %v1800_v12  ;;  %v140_v15 = vld [vmem:[#allocation2 + $0x18] sm:$0xff] }
   0xd   :  { %v258_v33 = vand.u32 4294901760, %v1820_v26  ;;  %v264_v34 = vand.u32 4294901760, %v1823_v27  ;;  %v1849_v38 = vsub.f32 %v146_v21, %v1827_v28  ;;  %v253_v39 = vsub.f32 %v1817_v25, %v252_v32  ;;  %360 = vmatpush.msra.mxu2 %v1820_v26  ;;  %419 = vmatpush.msra.mxu3 %v1802_v13 }
   0xe   :  { %51 = vrot.lane.b32.xlu1 %v1771_v3, %s1730_s1  ;;  %45 = vrot.lane.b32.xlu0 %v1776_v4, %s1730_s1  ;;  %v270_v36 = vand.u32 4294901760, %v1830_v29  ;;  %v276_v37 = vand.u32 4294901760, %v1833_v30  ;;  %v2961_v41 = vand.u32 4294901760, %v1836_v31  ;;  %v1867_v48 = vsub.f32 %v145_v22, %v1843_v35 }
   0xf   :  { %55 = vrot.lane.b32.xlu2 %v1781_v5, %s1730_s1  ;;  %v259_v40 = vsub.f32 %v1820_v26, %v258_v33  ;;  %v265_v42 = vsub.f32 %v1823_v27, %v264_v34  ;;  %206 = vmatpush.msra.mxu0 %v1802_v13  ;;  %v254_v46 = vand.u32 4294901760, %v253_v39  ;;  %v2960_v51 = vand.u32 4294901760, %v1849_v38  ;;  %v139_v39 = vld [vmem:[#allocation2 + $0x10] sm:$0xff] }
  0x10   :  { %363 = vmatpush.msra.mxu2 %v1823_v27  ;;  %421 = vmatpush.msra.mxu3 %v1806_v18  ;;  %v271_v49 = vsub.f32 %v1830_v29, %v270_v36  ;;  %v1875_v50 = vsub.f32 %v1833_v30, %v276_v37  ;;  %v1885_v54 = vsub.f32 %v1836_v31, %v2961_v41  ;;  %v1887_v55 = vand.u32 4294901760, %v144_v43  ;;  %v166_v27 = vld [vmem:[#allocation2 + $0xe8] sm:$0xff] }
  0x11   :  { %v260_v47 = vand.u32 4294901760, %v259_v40  ;;  %208 = vmatpush.msra.mxu0 %v1806_v18  ;;  %255 = vmatpush.msra.mxu1 %v254_v46  ;;  %v1889_v56 = vand.u32 4294901760, %v143_v44  ;;  %v1891_v57 = vand.u32 4294901760, %v142_v45  ;;  %v266_v62 = vand.u32 4294901760, %v265_v42  ;;  %v138_v46 = vld [vmem:[#allocation2 + $0x8] sm:$0xff] }
  0x12   :  { %366 = vmatpush.msra.mxu2 %v1830_v29  ;;  %423 = vmatpush.msra.mxu3 %v1808_v19  ;;  %v2959_v14 = vand.u32 4294901760, %v1867_v48  ;;  %v272_v16 = vand.u32 4294901760, %v271_v49  ;;  %v1915_v21 = vsub.f32 %v144_v43, %v1887_v55  ;;  %v278_v42 = vand.u32 4294901760, %v1875_v50 }
  0x13   :  { %210 = vmatpush.msra.mxu0 %v1808_v19  ;;  %261 = vmatpush.msra.mxu1 %v260_v47  ;;  %v1931_v22 = vsub.f32 %v142_v45, %v1891_v57  ;;  %v284_v47 = vand.u32 4294901760, %v1885_v54  ;;  %v1952_v50 = vand.u32 4294901760, %v139_v39  ;;  %v2112_v29 = vand.u32 4294901760, %v166_v27 }
  0x14   :  { %369 = vmatpush.msra.mxu2 %v1833_v30  ;;  %425 = vmatpush.msra.mxu3 %v1810_v20  ;;  %v300_v43 = vand.u32 4294901760, %v1915_v21  ;;  %v295_v45 = vsub.f32 %v1867_v48, %v2959_v14 }
  0x15   :  { %212 = vmatpush.msra.mxu0 %v1810_v20  ;;  %267 = vmatpush.msra.mxu1 %v266_v62  ;;  %v312_v54 = vand.u32 4294901760, %v1931_v22  ;;  %v1960_v62 = vand.u32 4294901760, %v138_v46 }
  0x16   :  { %57 = vrot.lane.b32.xlu1 %v1789_v6, %s1730_s1  ;;  %49 = vrot.lane.b32.xlu0 %v1794_v7, %s1730_s1  ;;  %v296_v41 = vand.u32 4294901760, %v295_v45 }
  0x17   :  { %372 = vmatpush.msra.mxu2 %v1836_v31  ;;  %427 = vmatpush.msra.mxu3 %v1827_v28 }
  0x18   :  { %273 = vmatpush.msra.mxu1 %v272_v16  ;;  %214 = vmatpush.msra.mxu0 %v1827_v28  ;;  %v137_v16 = vld [vmem:[#allocation2] sm:$0xff] }
  0x19   :  { %375 = vmatpush.msra.mxu2 %v1849_v38  ;;  %429 = vmatpush.msra.mxu3 %v1843_v35 }
  0x1a   :  { %279 = vmatpush.msra.mxu1 %v278_v42  ;;  %v313_v42 = vsub.f32 %v1931_v22, %v312_v54  ;;  %216 = vmatpush.msra.mxu0 %v1843_v35 }
  0x1b   :  { %378 = vmatpush.msra.mxu2 %v1867_v48  ;;  %431 = vmatpush.msra.mxu3 %v1887_v55 }
  0x1c   :  { %285 = vmatpush.msra.mxu1 %v284_v47  ;;  %218 = vmatpush.msra.mxu0 %v1887_v55 }
  0x1d   :  { %381 = vmatpush.msra.mxu2 %v1915_v21  ;;  %433 = vmatpush.msra.mxu3 %v1889_v56 }
  0x1e   :  { %220 = vmatpush.msra.mxu0 %v1889_v56 }
  0x1f   :  { %435 = vmatpush.msra.mxu3 %v1891_v57 }
  0x20   :  { %222 = vmatpush.msra.mxu0 %v1891_v57 }
  0x61   :  { %v1804_v17 = vpop.permute.xlu2 %53 }
  0x69   :  { %v56_v10 = vpop.permute.xlu2 %55 }
  0x6a   :  { %v64_v40 = vsel %vm59_vm0, %v1804_v17, %v56_v10 }
  0x78   :  { %v1812_v23 = vpop.permute.xlu1 %47  ;;  %v1814_v24 = vpop.permute.xlu0 %43 }
  0x80   :  { %v1879_v52 = vpop.permute.xlu1 %51  ;;  %v46_v53 = vpop.permute.xlu0 %45 }
  0x81   :  { %v63_v59 = vsel %vm59_vm0, %v1879_v52, %v1804_v17  ;;  %v60_v60 = vsel %vm59_vm0, %v1814_v24, %v46_v53  ;;  %v61_v61 = vsel %vm59_vm0, %v46_v53, %v1812_v23  ;;  %v1955_v53 = vmax.f32 %v1765_v2, %v64_v40 }
  0x82   :  { %v1903_v63 = vmax.f32 %v1771_v3, %v63_v59  ;;  %v1906_v8 = vmax.f32 %v1758_v1, %v60_v60  ;;  %v1909_v9 = vmax.f32 %v1776_v4, %v61_v61  ;;  %v1919_v1 = vsub.f32 %v143_v44, %v1889_v56 }
  0x83   :  { %v1921_v3 = vand.u32 4294901760, %v141_v58  ;;  %v289_v4 = vsub.f32 %v1849_v38, %v2960_v51  ;;  %v1939_v44 = vand.u32 4294901760, %v140_v15  ;;  %v301_v2 = vsub.f32 %v1915_v21, %v300_v43 }
  0x84   :  { %102 = vrot.lane.b32.xlu1 %v1903_v63, %s1731_s0  ;;  %96 = vrot.lane.b32.xlu0 %v1909_v9, %s1731_s0  ;;  %v306_v17 = vand.u32 4294901760, %v1919_v1 }
  0x85   :  { %94 = vrot.lane.b32.xlu2 %v1906_v8, %s1731_s0  ;;  %v1950_v49 = vsub.f32 %v141_v58, %v1921_v3  ;;  %v290_v61 = vand.u32 4294901760, %v289_v4  ;;  %v1969_v4 = vsub.f32 %v140_v15, %v1939_v44  ;;  %v1984_v15 = vsub.f32 %v139_v39, %v1952_v50  ;;  %384 = vmatpush.msra.mxu2 %v1919_v1 }
  0x86   :  { %v302_v39 = vand.u32 4294901760, %v301_v2  ;;  %437 = vmatpush.msra.mxu3 %v1921_v3  ;;  %224 = vmatpush.msra.mxu0 %v1921_v3 }
  0x87   :  { %291 = vmatpush.msra.mxu1 %v290_v61  ;;  %v324_v45 = vand.u32 4294901760, %v1969_v4  ;;  %v330_v47 = vand.u32 4294901760, %v1984_v15  ;;  %387 = vmatpush.msra.mxu2 %v1931_v22 }
  0x88   :  { %v58_v59 = vpop.permute.xlu1 %57  ;;  %v50_v60 = vpop.permute.xlu0 %49  ;;  %439 = vmatpush.msra.mxu3 %v1939_v44  ;;  %226 = vmatpush.msra.mxu0 %v1939_v44 }
  0x89   :  { %v65_v58 = vsel %vm59_vm0, %v56_v10, %v58_v59  ;;  %v62_v14 = vsel %vm59_vm0, %v1812_v23, %v50_v60  ;;  %v307_v23 = vsub.f32 %v1919_v1, %v306_v17  ;;  %v318_v10 = vand.u32 4294901760, %v1950_v49  ;;  %297 = vmatpush.msra.mxu1 %v296_v41  ;;  %390 = vmatpush.msra.mxu2 %v1950_v49 }
  0x8a   :  { %v1972_v40 = vmax.f32 %v1781_v5, %v65_v58  ;;  %v1975_v51 = vmax.f32 %v1753_v0, %v62_v14  ;;  %v1986_v5 = vand.u32 4294901760, %v137_v16  ;;  %v1993_v0 = vsub.f32 %v138_v46, %v1960_v62  ;;  %441 = vmatpush.msra.mxu3 %v1952_v50  ;;  %228 = vmatpush.msra.mxu0 %v1952_v50 }
  0x8b   :  { %v77_v14 = vsel %vm59_vm0, %v58_v59, %v1879_v52  ;;  %v308_v46 = vand.u32 4294901760, %v307_v23  ;;  %v319_v52 = vsub.f32 %v1950_v49, %v318_v10  ;;  %v76_v58 = vsel %vm59_vm0, %v50_v60, %v1814_v24  ;;  %303 = vmatpush.msra.mxu1 %v302_v39  ;;  %393 = vmatpush.msra.mxu2 %v1969_v4 }
  0x8c   :  { %106 = vrot.lane.b32.xlu1 %v1972_v40, %s1731_s0  ;;  %98 = vrot.lane.b32.xlu0 %v1975_v51, %s1731_s0  ;;  %v2011_v59 = vsub.f32 %v137_v16, %v1986_v5  ;;  %v2014_v61 = vmax.f32 %v1789_v6, %v77_v14  ;;  %v314_v41 = vand.u32 4294901760, %v313_v42  ;;  %v325_v2 = vsub.f32 %v1969_v4, %v324_v45  ;;  %v161_v4 = vld [vmem:[#allocation2 + $0xc0] sm:$0xff] }
  0x8d   :  { %104 = vrot.lane.b32.xlu2 %v1955_v53, %s1731_s0  ;;  %v336_v16 = vand.u32 4294901760, %v1993_v0  ;;  %v2028_v6 = vmax.f32 %v1794_v7, %v76_v58  ;;  %309 = vmatpush.msra.mxu1 %v308_v46  ;;  %v320_v24 = vand.u32 4294901760, %v319_v52  ;;  %v331_v60 = vsub.f32 %v1984_v15, %v330_v47 }
  0x8e   :  { %v342_v23 = vand.u32 4294901760, %v2011_v59  ;;  %v326_v7 = vand.u32 4294901760, %v325_v2  ;;  %396 = vmatpush.msra.mxu2 %v1984_v15  ;;  %443 = vmatpush.msra.mxu3 %v1960_v62 }
  0x8f   :  { %315 = vmatpush.msra.mxu1 %v314_v41  ;;  %v337_v14 = vsub.f32 %v1993_v0, %v336_v16  ;;  %v332_v39 = vand.u32 4294901760, %v331_v60  ;;  %230 = vmatpush.msra.mxu0 %v1960_v62 }
  0x90   :  { %v343_v42 = vsub.f32 %v2011_v59, %v342_v23  ;;  %399 = vmatpush.msra.mxu2 %v1993_v0  ;;  %445 = vmatpush.msra.mxu3 %v1986_v5 }
  0x91   :  { %321 = vmatpush.msra.mxu1 %v320_v24  ;;  %v338_v46 = vand.u32 4294901760, %v337_v14  ;;  %232 = vmatpush.msra.mxu0 %v1986_v5  ;;  %v159_v24 = vld [vmem:[#allocation2 + $0xb0] sm:$0xff] }
  0x92   :  { %v344_v52 = vand.u32 4294901760, %v343_v42  ;;  %402 = vmatpush.msra.mxu2 %v2011_v59  ;;  %v158_v42 = vld [vmem:[#allocation2 + $0xa8] sm:$0xff] }
  0x93   :  { %327 = vmatpush.msra.mxu1 %v326_v7  ;;  %462 = vmatpush.msrb.mxu0 %v252_v32  ;;  %v2187_v7 = vand.u32 4294901760, %v159_v24 }
  0x94   :  { %108 = vrot.lane.b32.xlu0 %v2014_v61, %s1731_s0 }
  0x95   :  { %100 = vrot.lane.b32.xlu2 %v2028_v6, %s1731_s0  ;;  %333 = vmatpush.msra.mxu1 %v332_v39 }
  0x96   :  { %466 = vmatpush.msrb.mxu0 %v258_v33 }
  0x97   :  { %339 = vmatpush.msra.mxu1 %v338_v46 }
  0x98   :  { %470 = vmatpush.msrb.mxu0 %v264_v34 }
  0x99   :  { %345 = vmatpush.msra.mxu1 %v344_v52 }
  0x9a   :  { %474 = vmatpush.msrb.mxu0 %v270_v36  ;;  %v164_v36 = vld [vmem:[#allocation2 + $0xd8] sm:$0xff] }
  0x9b   :  { %533 = vmatpush.msrb.mxu1 %v1798_v11  ;;  %v3002_v11 = vand.u32 4294901760, %v1836_v31  ;;  %v165_v31 = vld [vmem:[#allocation2 + $0xe0] sm:$0xff] }
  0x9c   :  { %478 = vmatpush.msrb.mxu0 %v276_v37  ;;  %v2125_v34 = vand.u32 4294901760, %v165_v31 }
  0x9d   :  { %535 = vmatpush.msrb.mxu1 %v1800_v12  ;;  %v3003_v12 = vand.u32 4294901760, %v1849_v38 }
  0x9e   :  { %482 = vmatpush.msrb.mxu0 %v3002_v11  ;;  %v2195_v11 = vand.u32 4294901760, %v158_v42 }
  0x9f   :  { %537 = vmatpush.msrb.mxu1 %v1802_v13  ;;  %v3004_v13 = vand.u32 4294901760, %v1867_v48 }
  0xa0   :  { %486 = vmatpush.msrb.mxu0 %v3003_v12  ;;  %v2198_v12 = vsub.f32 %v159_v24, %v2187_v7 }
  0xa1   :  { %539 = vmatpush.msrb.mxu1 %v1806_v18  ;;  %v168_v18 = vld [vmem:[#allocation2 + $0xf8] sm:$0xff] }
  0xa2   :  { %490 = vmatpush.msrb.mxu0 %v3004_v13 }
  0xa3   :  { %541 = vmatpush.msrb.mxu1 %v1808_v19  ;;  %v2096_v19 = vand.u32 4294901760, %v168_v18 }
  0xa4   :  { %494 = vmatpush.msrb.mxu0 %v300_v43 }
  0xa5   :  { %543 = vmatpush.msrb.mxu1 %v1810_v20  ;;  %v167_v20 = vld [vmem:[#allocation2 + $0xf0] sm:$0xff]  ;;  %574 = vmatpush.msrb.mxu2 %v2096_v19  ;;  %v2105_v26 = vsub.f32 %v168_v18, %v2096_v19  ;;  %v157_v18 = vld [vmem:[#allocation2 + $0xa0] sm:$0xff] }
  0xa6   :  { %498 = vmatpush.msrb.mxu0 %v306_v17  ;;  %v2102_v25 = vand.u32 4294901760, %v167_v20 }
  0xa7   :  { %545 = vmatpush.msrb.mxu1 %v1827_v28  ;;  %v624_v28 = vand.u32 4294901760, %v2105_v26 }
  0xa8   :  { %502 = vmatpush.msrb.mxu0 %v312_v54  ;;  %576 = vmatpush.msrb.mxu2 %v2102_v25  ;;  %v2115_v30 = vsub.f32 %v167_v20, %v2102_v25 }
  0xa9   :  { %547 = vmatpush.msrb.mxu1 %v1843_v35  ;;  %v625_v32 = vsub.f32 %v2105_v26, %v624_v28  ;;  %v2128_v35 = vsub.f32 %v166_v27, %v2112_v29  ;;  %v2968_v27 = vand.u32 4294901760, %v2198_v12 }
  0xaa   :  { %506 = vmatpush.msrb.mxu0 %v318_v10  ;;  %578 = vmatpush.msrb.mxu2 %v2112_v29  ;;  %v630_v33 = vand.u32 4294901760, %v2115_v30 }
  0xab   :  { %549 = vmatpush.msrb.mxu1 %v1887_v55  ;;  %v626_v37 = vand.u32 4294901760, %v625_v32  ;;  %v636_v48 = vand.u32 4294901760, %v2128_v35  ;;  %v2138_v55 = vand.u32 4294901760, %v164_v36  ;;  %v2211_v32 = vsub.f32 %v158_v42, %v2195_v11 }
  0xac   :  { %510 = vmatpush.msrb.mxu0 %v324_v45  ;;  %v631_v38 = vsub.f32 %v2115_v30, %v630_v33  ;;  %580 = vmatpush.msrb.mxu2 %v2125_v34 }
  0xad   :  { %551 = vmatpush.msrb.mxu1 %v1889_v56  ;;  %v2141_v56 = vsub.f32 %v165_v31, %v2125_v34  ;;  %627 = vmatpush.msrb.mxu3 %v626_v37  ;;  %v637_v1 = vsub.f32 %v2128_v35, %v636_v48  ;;  %v2150_v22 = vsub.f32 %v164_v36, %v2138_v55  ;;  %v2208_v31 = vand.u32 4294901760, %v157_v18  ;;  %v156_v37 = vld [vmem:[#allocation2 + $0x98] sm:$0xff] }
  0xae   :  { %514 = vmatpush.msrb.mxu0 %v330_v47  ;;  %v632_v21 = vand.u32 4294901760, %v631_v38  ;;  %582 = vmatpush.msrb.mxu2 %v2138_v55  ;;  %v160_v47 = vld [vmem:[#allocation2 + $0xb8] sm:$0xff] }
  0xaf   :  { %553 = vmatpush.msrb.mxu1 %v1891_v57  ;;  %v163_v57 = vld [vmem:[#allocation2 + $0xd0] sm:$0xff]  ;;  %v642_v43 = vand.u32 4294901760, %v2141_v56  ;;  %v638_v17 = vand.u32 4294901760, %v637_v1  ;;  %v648_v49 = vand.u32 4294901760, %v2150_v22  ;;  %v2178_v2 = vand.u32 4294901760, %v160_v47 }
  0xb0   :  { %518 = vmatpush.msrb.mxu0 %v336_v16  ;;  %633 = vmatpush.msrb.mxu3 %v632_v21  ;;  %v2967_v21 = vand.u32 4294901760, %v2211_v32  ;;  %v2218_v1 = vand.u32 4294901760, %v156_v37 }
  0xb1   :  { %555 = vmatpush.msrb.mxu1 %v1921_v3  ;;  %v2147_v3 = vand.u32 4294901760, %v163_v57  ;;  %v649_v10 = vsub.f32 %v2150_v22, %v648_v49  ;;  %v2190_v14 = vsub.f32 %v160_v47, %v2178_v2 }
  0xb2   :  { %522 = vmatpush.msrb.mxu0 %v342_v23  ;;  %639 = vmatpush.msrb.mxu3 %v638_v17  ;;  %v155_v17 = vld [vmem:[#allocation2 + $0x90] sm:$0xff] }
  0xb3   :  { %557 = vmatpush.msrb.mxu1 %v1939_v44  ;;  %v162_v44 = vld [vmem:[#allocation2 + $0xc8] sm:$0xff]  ;;  %584 = vmatpush.msrb.mxu2 %v2147_v3  ;;  %v2158_v54 = vsub.f32 %v163_v57, %v2147_v3  ;;  %v650_v59 = vand.u32 4294901760, %v649_v10  ;;  %v2969_v52 = vand.u32 4294901760, %v2190_v14  ;;  %v679_v57 = vsub.f32 %v2198_v12, %v2968_v27 }
  0xb4   :  { %v2227_v10 = vand.u32 4294901760, %v155_v17 }
  0xb5   :  { %559 = vmatpush.msrb.mxu1 %v1952_v50  ;;  %v2155_v50 = vand.u32 4294901760, %v162_v44  ;;  %v654_v15 = vand.u32 4294901760, %v2158_v54  ;;  %v673_v20 = vsub.f32 %v2190_v14, %v2969_v52 }
  0xb7   :  { %561 = vmatpush.msrb.mxu1 %v1960_v62  ;;  %v643_v62 = vsub.f32 %v2141_v56, %v642_v43  ;;  %586 = vmatpush.msrb.mxu2 %v2155_v50  ;;  %v2171_v0 = vsub.f32 %v162_v44, %v2155_v50  ;;  %v655_v58 = vsub.f32 %v2158_v54, %v654_v15  ;;  %v674_v38 = vand.u32 4294901760, %v673_v20 }
  0xb8   :  { %v2221_v44 = vsub.f32 %v157_v18, %v2208_v31 }
  0xb9   :  { %563 = vmatpush.msrb.mxu1 %v1986_v5  ;;  %v2168_v5 = vand.u32 4294901760, %v161_v4  ;;  %v644_v45 = vand.u32 4294901760, %v643_v62  ;;  %v660_v41 = vand.u32 4294901760, %v2171_v0  ;;  %v656_v60 = vand.u32 4294901760, %v655_v58 }
  0xba   :  { %v680_v62 = vand.u32 4294901760, %v679_v57  ;;  %v2965_v47 = vand.u32 4294901760, %v2221_v44 }
  0xbb   :  { %588 = vmatpush.msrb.mxu2 %v2168_v5  ;;  %645 = vmatpush.msrb.mxu3 %v644_v45  ;;  %v2181_v16 = vsub.f32 %v161_v4, %v2168_v5  ;;  %v661_v23 = vsub.f32 %v2171_v0, %v660_v41  ;;  %v685_v4 = vsub.f32 %v2211_v32, %v2967_v21 }
  0xbc   :  { %v2230_v45 = vsub.f32 %v156_v37, %v2218_v1  ;;  %v691_v42 = vsub.f32 %v2221_v44, %v2965_v47 }
  0xbd   :  { %590 = vmatpush.msrb.mxu2 %v2178_v2  ;;  %651 = vmatpush.msrb.mxu3 %v650_v59  ;;  %v666_v39 = vand.u32 4294901760, %v2181_v16  ;;  %v662_v46 = vand.u32 4294901760, %v661_v23  ;;  %v154_v59 = vld [vmem:[#allocation2 + $0x88] sm:$0xff]  ;;  %v686_v58 = vand.u32 4294901760, %v685_v4  ;;  %v2238_v23 = vsub.f32 %v155_v17, %v2227_v10 }
  0xbe   :  { %v2963_v24 = vand.u32 4294901760, %v2230_v45  ;;  %v692_v37 = vand.u32 4294901760, %v691_v42 }
  0xbf   :  { %592 = vmatpush.msrb.mxu2 %v2187_v7  ;;  %657 = vmatpush.msrb.mxu3 %v656_v60  ;;  %v667_v13 = vsub.f32 %v2181_v16, %v666_v39  ;;  %v2235_v60 = vand.u32 4294901760, %v154_v59  ;;  %v2962_v18 = vand.u32 4294901760, %v2238_v23 }
  0xc1   :  { %594 = vmatpush.msrb.mxu2 %v2195_v11  ;;  %663 = vmatpush.msrb.mxu3 %v662_v46  ;;  %v668_v36 = vand.u32 4294901760, %v667_v13  ;;  %v153_v46 = vld [vmem:[#allocation2 + $0x80] sm:$0xff]  ;;  %v697_v13 = vsub.f32 %v2230_v45, %v2963_v24  ;;  %v703_v57 = vsub.f32 %v2238_v23, %v2962_v18 }
  0xc2   :  { %v2248_v20 = vand.u32 4294901760, %v153_v46 }
  0xc3   :  { %596 = vmatpush.msrb.mxu2 %v2208_v31  ;;  %669 = vmatpush.msrb.mxu3 %v668_v36  ;;  %v2251_v36 = vsub.f32 %v154_v59, %v2235_v60  ;;  %v704_v4 = vand.u32 4294901760, %v703_v57 }
  0xc5   :  { %598 = vmatpush.msrb.mxu2 %v2218_v1  ;;  %675 = vmatpush.msrb.mxu3 %v674_v38  ;;  %v698_v38 = vand.u32 4294901760, %v697_v13  ;;  %v2964_v17 = vand.u32 4294901760, %v2251_v36 }
  0xc7   :  { %600 = vmatpush.msrb.mxu2 %v2227_v10  ;;  %681 = vmatpush.msrb.mxu3 %v680_v62  ;;  %v2259_v62 = vsub.f32 %v153_v46, %v2248_v20  ;;  %v709_v59 = vsub.f32 %v2251_v36, %v2964_v17 }
  0xc9   :  { %602 = vmatpush.msrb.mxu2 %v2235_v60  ;;  %687 = vmatpush.msrb.mxu3 %v686_v58  ;;  %v2966_v58 = vand.u32 4294901760, %v2259_v62  ;;  %v710_v42 = vand.u32 4294901760, %v709_v59 }
  0xcb   :  { %604 = vmatpush.msrb.mxu2 %v2248_v20  ;;  %693 = vmatpush.msrb.mxu3 %v692_v37  ;;  %v715_v13 = vsub.f32 %v2259_v62, %v2966_v58 }
  0xcd   :  { %699 = vmatpush.msrb.mxu3 %v698_v38  ;;  %v716_v18 = vand.u32 4294901760, %v715_v13 }
  0xcf   :  { %705 = vmatpush.msrb.mxu3 %v704_v4 }
  0xd1   :  { %711 = vmatpush.msrb.mxu3 %v710_v42 }
  0xd3   :  { %717 = vmatpush.msrb.mxu3 %v716_v18 }
  0xdf   :  { %v95_v24 = vpop.permute.xlu2 %94 }
  0xe7   :  { %v105_v46 = vpop.permute.xlu2 %104 }
  0xef   :  { %v2268_v37 = vpop.permute.xlu2 %100 }
  0xf0   :  { %v2272_v57 = vsel %vm110_vm1, %v2268_v37, %v95_v24 }
  0xf6   :  { %v103_v17 = vpop.permute.xlu1 %102  ;;  %v97_v38 = vpop.permute.xlu0 %96 }
  0xf7   :  { %v114_v59 = vsel %vm110_vm1, %v103_v17, %v105_v46  ;;  %v111_v47 = vsel %vm110_vm1, %v95_v24, %v97_v38 }
  0xf8   :  { %v133_v4 = vmax.f32 %v1903_v63, %v114_v59  ;;  %v129_v13 = vmax.f32 %v1906_v8, %v111_v47 }
  0xfa   :  { %v2278_v42 = vand.u32 4294901760, %v129_v13  ;;  %v2280_v18 = vand.u32 4294901760, %v133_v4 }
  0xfc   :  { %347 = vmatmul.f32.vlgmr.msra.gmra.mxu1 %v2278_v42  ;;  %v234_v58 = vsub.f32 %v129_v13, %v2278_v42  ;;  %v242_v24 = vsub.f32 %v133_v4, %v2280_v18 }
  0xfd   :  { %787 = vmatpush.msra.mxu1 %v2096_v19 }
  0xfe   :  { %405 = vmatmul.f32.vlgmr.msra.gmra.mxu2 %v234_v58  ;;  %v2285_v21 = vpop.permute.xlu0 %98  ;;  %v235_v27 = vand.u32 4294901760, %v234_v58  ;;  %v2287_v52 = vpop.permute.xlu1 %106 }
  0xff   :  { %789 = vmatpush.msra.mxu1 %v2102_v25  ;;  %834 = vmatpush.msra.mxu2 %v624_v28  ;;  %v112_v63 = vsel %vm110_vm1, %v97_v38, %v2285_v21  ;;  %v115_v59 = vsel %vm110_vm1, %v105_v46, %v2287_v52  ;;  %v3007_v38 = vand.u32 4294901760, %v2211_v32 }
 0x100   :  { %v130_v8 = vmax.f32 %v1909_v9, %v112_v63  ;;  %449 = vmatmul.f32.vlgmr.msra.gmra.mxu3 %v235_v27  ;;  %v236_v47 = vsub.f32 %v234_v58, %v235_v27  ;;  %v134_v27 = vmax.f32 %v1955_v53, %v115_v59 }
 0x101   :  { %791 = vmatpush.msra.mxu1 %v2112_v29  ;;  %838 = vmatpush.msra.mxu2 %v630_v33  ;;  %v243_v33 = vand.u32 4294901760, %v242_v24 }
 0x102   :  { %v2301_v13 = vand.u32 4294901760, %v130_v8  ;;  %905 = vmatpush.msra.mxu3 %v2096_v19  ;;  %v237_v28 = vand.u32 4294901760, %v236_v47  ;;  %v3008_v47 = vand.u32 4294901760, %v2221_v44 }
 0x103   :  { %793 = vmatpush.msra.mxu1 %v2125_v34  ;;  %842 = vmatpush.msra.mxu2 %v636_v48  ;;  %v2327_v48 = vand.u32 4294901760, %v134_v27 }
 0x104   :  { %v2308_v9 = vsub.f32 %v130_v8, %v2301_v13  ;;  %907 = vmatpush.msra.mxu3 %v2102_v25  ;;  %238 = vmatmul.f32.vlgmr.msra.gmra.mxu0 %v237_v28  ;;  %v179_v8 = vld [vmem:[#allocation2 + $0x150] sm:$0xff] }
 0x105   :  { %351 = vmatmul.f32.gmra.mxu1 %v2280_v18  ;;  %729 = vmatpush.msra.mxu0 %v2105_v26  ;;  %v244_v26 = vsub.f32 %v242_v24, %v243_v33  ;;  %v2414_v28 = vand.u32 4294901760, %v179_v8 }
 0x106   :  { %795 = vmatpush.msra.mxu1 %v2138_v55  ;;  %846 = vmatpush.msra.mxu2 %v642_v43  ;;  %v2317_v19 = vpop.permute.xlu0 %108  ;;  %v607_v53 = vand.u32 4294901760, %v2308_v9 }
 0x107   :  { %909 = vmatpush.msra.mxu3 %v2112_v29  ;;  %410 = vmatmul.f32.gmra.mxu2 %v242_v24  ;;  %v2322_v25 = vsel %vm110_vm1, %v2317_v19, %v103_v17  ;;  %v245_v43 = vand.u32 4294901760, %v244_v26 }
 0x108   :  { %732 = vmatpush.msra.mxu0 %v2115_v30  ;;  %797 = vmatpush.msra.mxu1 %v2147_v3  ;;  %v608_v29 = vsub.f32 %v2308_v9, %v607_v53  ;;  %v184_v30 = vld [vmem:[#allocation2 + $0x178] sm:$0xff] }
 0x109   :  { %850 = vmatpush.msra.mxu2 %v648_v49  ;;  %911 = vmatpush.msra.mxu3 %v2125_v34  ;;  %v2342_v34 = vsub.f32 %v134_v27, %v2327_v48  ;;  %v183_v49 = vld [vmem:[#allocation2 + $0x170] sm:$0xff]  ;;  %v177_v27 = vld [vmem:[#allocation2 + $0x140] sm:$0xff] }
 0x10a   :  { %455 = vmatmul.f32.gmra.mxu3 %v243_v33  ;;  %735 = vmatpush.msra.mxu0 %v2128_v35  ;;  %v2348_v35 = vand.u32 4294901760, %v184_v30  ;;  %v3009_v33 = vand.u32 4294901760, %v2230_v45 }
 0x10b   :  { %799 = vmatpush.msra.mxu1 %v2155_v50  ;;  %854 = vmatpush.msra.mxu2 %v654_v15  ;;  %v182_v15 = vld [vmem:[#allocation2 + $0x168] sm:$0xff] }
 0x10c   :  { %913 = vmatpush.msra.mxu3 %v2138_v55  ;;  %738 = vmatpush.msra.mxu0 %v2141_v56  ;;  %v609_v55 = vand.u32 4294901760, %v608_v29  ;;  %v615_v56 = vand.u32 4294901760, %v2342_v34 }
 0x10d   :  { %801 = vmatpush.msra.mxu1 %v2168_v5  ;;  %858 = vmatpush.msra.mxu2 %v660_v41  ;;  %v3005_v41 = vand.u32 4294901760, %v2190_v14 }
 0x10e   :  { %915 = vmatpush.msra.mxu3 %v2147_v3  ;;  %246 = vmatmul.f32.gmra.mxu0 %v245_v43  ;;  %v2357_v3 = vand.u32 4294901760, %v183_v49  ;;  %v616_v17 = vsub.f32 %v2342_v34, %v615_v56  ;;  %v2437_v43 = vsub.f32 %v179_v8, %v2414_v28 }
 0x10f   :  { %565 = vmatmul.f32.vlgmr.msrb.gmra.mxu1 %v2278_v42  ;;  %741 = vmatpush.msra.mxu0 %v2150_v22  ;;  %v2362_v22 = vsub.f32 %v184_v30, %v2348_v35  ;;  %v3010_v30 = vand.u32 4294901760, %v2238_v23 }
 0x110   :  { %803 = vmatpush.msra.mxu1 %v2178_v2  ;;  %862 = vmatpush.msra.mxu2 %v666_v39  ;;  %v181_v39 = vld [vmem:[#allocation2 + $0x160] sm:$0xff]  ;;  %v2378_v58 = vsub.f32 %v183_v49, %v2357_v3  ;;  %v2439_v49 = vand.u32 4294901760, %v177_v27 }
 0x111   :  { %917 = vmatpush.msra.mxu3 %v2155_v50  ;;  %610 = vmatmul.f32.vlgmr.msrb.gmra.mxu2 %v609_v55  ;;  %v2369_v50 = vand.u32 4294901760, %v182_v15  ;;  %v2383_v46 = vand.u32 4294901760, %v181_v39  ;;  %v176_v55 = vld [vmem:[#allocation2 + $0x138] sm:$0xff] }
 0x112   :  { %744 = vmatpush.msra.mxu0 %v2158_v54  ;;  %805 = vmatpush.msra.mxu1 %v2187_v7  ;;  %v3006_v54 = vand.u32 4294901760, %v2198_v12 }
 0x113   :  { %866 = vmatpush.msra.mxu2 %v3005_v41  ;;  %919 = vmatpush.msra.mxu3 %v2168_v5  ;;  %v180_v5 = vld [vmem:[#allocation2 + $0x158] sm:$0xff]  ;;  %v2391_v4 = vsub.f32 %v182_v15, %v2369_v50  ;;  %v3011_v15 = vand.u32 4294901760, %v2251_v36 }
 0x114   :  { %719 = vmatmul.f32.vlgmr.msrb.gmra.mxu3 %v2301_v13  ;;  %747 = vmatpush.msra.mxu0 %v2171_v0  ;;  %v2987_v0 = vand.u32 4294901760, %v2362_v22  ;;  %v2393_v63 = vand.u32 4294901760, %v180_v5 }
 0x115   :  { %807 = vmatpush.msra.mxu1 %v2195_v11  ;;  %870 = vmatpush.msra.mxu2 %v3006_v54  ;;  %v2984_v24 = vand.u32 4294901760, %v2391_v4  ;;  %v2454_v54 = vand.u32 4294901760, %v176_v55 }
 0x116   :  { %921 = vmatpush.msra.mxu3 %v2178_v2  ;;  %750 = vmatpush.msra.mxu0 %v2181_v16  ;;  %v617_v2 = vand.u32 4294901760, %v616_v17  ;;  %v2985_v16 = vand.u32 4294901760, %v2378_v58  ;;  %v2412_v59 = vsub.f32 %v180_v5, %v2393_v63 }
 0x117   :  { %809 = vmatpush.msra.mxu1 %v2208_v31  ;;  %874 = vmatpush.msra.mxu2 %v3007_v38  ;;  %v2981_v38 = vand.u32 4294901760, %v2437_v43 }
 0x118   :  { %923 = vmatpush.msra.mxu3 %v2187_v7  ;;  %524 = vmatmul.f32.vlgmr.msrb.gmra.mxu0 %v2278_v42  ;;  %v997_v7 = vsub.f32 %v2362_v22, %v2987_v0  ;;  %v2405_v42 = vsub.f32 %v181_v39, %v2383_v46  ;;  %v175_v39 = vld [vmem:[#allocation2 + $0x130] sm:$0xff]  ;;  %v192_v0 = vld [vmem:[#allocation2 + $0x1b8] sm:$0xff] }
 0x119   :  { %569 = vmatmul.f32.gmra.mxu1 %v2280_v18  ;;  %753 = vmatpush.msra.mxu0 %v2190_v14  ;;  %v178_v14 = vld [vmem:[#allocation2 + $0x148] sm:$0xff] }
 0x11a   :  { %811 = vmatpush.msra.mxu1 %v2218_v1  ;;  %878 = vmatpush.msra.mxu2 %v3008_v47  ;;  %v2983_v26 = vand.u32 4294901760, %v2405_v42  ;;  %v2425_v29 = vand.u32 4294901760, %v178_v14  ;;  %v173_v47 = vld [vmem:[#allocation2 + $0x120] sm:$0xff] }
 0x11b   :  { %925 = vmatpush.msra.mxu3 %v2195_v11  ;;  %618 = vmatmul.f32.gmra.mxu2 %v617_v2  ;;  %v1003_v11 = vsub.f32 %v2378_v58, %v2985_v16  ;;  %v2464_v2 = vsub.f32 %v177_v27, %v2439_v49  ;;  %v2489_v27 = vand.u32 4294901760, %v173_v47 }
 0x11c   :  { %756 = vmatpush.msra.mxu0 %v2198_v12  ;;  %813 = vmatpush.msra.mxu1 %v2227_v10  ;;  %v998_v12 = vand.u32 4294901760, %v997_v7  ;;  %v2449_v41 = vsub.f32 %v178_v14, %v2425_v29  ;;  %v2475_v7 = vsub.f32 %v176_v55, %v2454_v54 }
 0x11d   :  { %882 = vmatpush.msra.mxu2 %v3009_v33  ;;  %927 = vmatpush.msra.mxu3 %v2208_v31  ;;  %v1009_v31 = vsub.f32 %v2391_v4, %v2984_v24  ;;  %v2978_v33 = vand.u32 4294901760, %v2464_v2 }
 0x11e   :  { %723 = vmatmul.f32.gmra.mxu3 %v2327_v48  ;;  %759 = vmatpush.msra.mxu0 %v2211_v32  ;;  %v2982_v32 = vand.u32 4294901760, %v2412_v59  ;;  %v2979_v8 = vand.u32 4294901760, %v2449_v41 }
 0x11f   :  { %815 = vmatpush.msra.mxu1 %v2235_v60  ;;  %886 = vmatpush.msra.mxu2 %v3010_v30  ;;  %v1010_v17 = vand.u32 4294901760, %v1009_v31  ;;  %v171_v30 = vld [vmem:[#allocation2 + $0x110] sm:$0xff]  ;;  %v2973_v31 = vand.u32 4294901760, %v2475_v7 }
 0x120   :  { %929 = vmatpush.msra.mxu3 %v2218_v1  ;;  %762 = vmatpush.msra.mxu0 %v2221_v44  ;;  %v1004_v1 = vand.u32 4294901760, %v1003_v11  ;;  %v1015_v44 = vsub.f32 %v2405_v42, %v2983_v26  ;;  %v1021_v5 = vsub.f32 %v2412_v59, %v2982_v32  ;;  %v172_v11 = vld [vmem:[#allocation2 + $0x118] sm:$0xff]  ;;  %v193_v32 = vld [vmem:[#allocation2 + $0x1c0] sm:$0xff] }
 0x121   :  { %817 = vmatpush.msra.mxu1 %v2248_v20  ;;  %890 = vmatpush.msra.mxu2 %v3011_v15  ;;  %v2501_v55 = vand.u32 4294901760, %v172_v11  ;;  %v1039_v15 = vsub.f32 %v2464_v2, %v2978_v33 }
 0x122   :  { %931 = vmatpush.msra.mxu3 %v2227_v10  ;;  %528 = vmatmul.f32.gmra.mxu0 %v2280_v18  ;;  %v3012_v10 = vand.u32 4294901760, %v2259_v62  ;;  %v174_v18 = vld [vmem:[#allocation2 + $0x128] sm:$0xff] }
 0x123   :  { %999 = vmatpush.msrb.mxu1 %v998_v12  ;;  %765 = vmatpush.msra.mxu0 %v2230_v45  ;;  %v1016_v45 = vand.u32 4294901760, %v1015_v44  ;;  %v2477_v14 = vand.u32 4294901760, %v174_v18  ;;  %v1033_v12 = vsub.f32 %v2449_v41, %v2979_v8 }
 0x124   :  { %821 = vmatmul.f32.vlgmr.msra.gmra.mxu1 %v607_v53  ;;  %894 = vmatpush.msra.mxu2 %v3012_v10  ;;  %v2467_v53 = vand.u32 4294901760, %v175_v39  ;;  %v2513_v10 = vand.u32 4294901760, %v171_v30 }
 0x125   :  { %933 = vmatpush.msra.mxu3 %v2235_v60  ;;  %1005 = vmatpush.msrb.mxu1 %v1004_v1  ;;  %v1022_v60 = vand.u32 4294901760, %v1021_v5  ;;  %v170_v1 = vld [vmem:[#allocation2 + $0x108] sm:$0xff]  ;;  %v1045_v5 = vsub.f32 %v2475_v7, %v2973_v31 }
 0x126   :  { %1101 = vmatpush.msrb.mxu2 %v2362_v22  ;;  %768 = vmatpush.msra.mxu0 %v2238_v23  ;;  %v1027_v23 = vsub.f32 %v2437_v43, %v2981_v38 }
 0x127   :  { %896 = vmatmul.f32.vlgmr.msra.gmra.mxu2 %v2301_v13  ;;  %935 = vmatpush.msra.mxu3 %v2248_v20  ;;  %v2487_v20 = vsub.f32 %v175_v39, %v2467_v53  ;;  %v2511_v39 = vsub.f32 %v173_v47, %v2489_v27  ;;  %v2527_v47 = vand.u32 4294901760, %v170_v1 }
 0x128   :  { %1011 = vmatpush.msrb.mxu1 %v1010_v17  ;;  %1104 = vmatpush.msrb.mxu2 %v2378_v58  ;;  %v169_v17 = vld [vmem:[#allocation2 + $0x100] sm:$0xff] }
 0x129   :  { %1159 = vmatpush.msrb.mxu3 %v2348_v35  ;;  %771 = vmatpush.msra.mxu0 %v2251_v36  ;;  %v2499_v36 = vsub.f32 %v174_v18, %v2477_v14  ;;  %v2970_v44 = vand.u32 4294901760, %v2487_v20 }
 0x12a   :  { %937 = vmatmul.f32.vlgmr.msra.gmra.mxu3 %v2301_v13  ;;  %1017 = vmatpush.msrb.mxu1 %v1016_v45  ;;  %v1028_v13 = vand.u32 4294901760, %v1027_v23  ;;  %v2525_v45 = vsub.f32 %v172_v11, %v2501_v55  ;;  %v2537_v23 = vsub.f32 %v171_v30, %v2513_v10  ;;  %v2539_v11 = vand.u32 4294901760, %v169_v17 }
 0x12b   :  { %1107 = vmatpush.msrb.mxu2 %v2391_v4  ;;  %1161 = vmatpush.msrb.mxu3 %v2357_v3  ;;  %v2971_v18 = vand.u32 4294901760, %v2499_v36 }
 0x12c   :  { %774 = vmatpush.msra.mxu0 %v2259_v62  ;;  %1023 = vmatpush.msrb.mxu1 %v1022_v60  ;;  %v1034_v62 = vand.u32 4294901760, %v1033_v12  ;;  %v2972_v60 = vand.u32 4294901760, %v2511_v39  ;;  %v1046_v12 = vand.u32 4294901760, %v1045_v5  ;;  %v2974_v5 = vand.u32 4294901760, %v2537_v23 }
 0x12d   :  { %1110 = vmatpush.msrb.mxu2 %v2405_v42  ;;  %1163 = vmatpush.msrb.mxu3 %v2369_v50 }
 0x12e   :  { %946 = vmatpush.msrb.mxu0 %v2348_v35  ;;  %827 = vmatmul.f32.gmra.mxu1 %v615_v56  ;;  %v1051_v56 = vsub.f32 %v2487_v20, %v2970_v44  ;;  %v2549_v44 = vsub.f32 %v170_v1, %v2527_v47  ;;  %v113_v1 = vsel %vm110_vm1, %v2285_v21, %v2268_v37 }
 0x12f   :  { %777 = vmatmul.f32.vlgmr.msra.gmra.mxu0 %v2308_v9  ;;  %1029 = vmatpush.msrb.mxu1 %v1028_v13  ;;  %v1040_v9 = vand.u32 4294901760, %v1039_v15  ;;  %v1057_v13 = vsub.f32 %v2499_v36, %v2971_v18  ;;  %v2976_v15 = vand.u32 4294901760, %v2525_v45  ;;  %v2559_v18 = vsub.f32 %v169_v17, %v2539_v11 }
 0x130   :  { %948 = vmatpush.msrb.mxu0 %v2357_v3  ;;  %1113 = vmatpush.msrb.mxu2 %v2412_v59  ;;  %3013 = vst [vmem:[#allocation5_spill] sm:$0xff] %v2549_v44  ;;  %v1052_v30 = vand.u32 4294901760, %v1051_v56  ;;  %v2975_v17 = vand.u32 4294901760, %v2549_v44  ;;  %v1075_v21 = vsub.f32 %v2537_v23, %v2974_v5  ;;  %v198_v5 = vld [vmem:[#allocation2 + $0x1e8] sm:$0xff] }
 0x131   :  { %1165 = vmatpush.msrb.mxu3 %v2383_v46  ;;  %900 = vmatmul.f32.gmra.mxu2 %v2327_v48  ;;  %3014 = vst [vmem:[#allocation6_spill] sm:$0xff] %v2559_v18  ;;  %v1069_v56 = vsub.f32 %v2525_v45, %v2976_v15  ;;  %v2977_v37 = vand.u32 4294901760, %v2559_v18  ;;  %v116_v15 = vsel %vm110_vm1, %v2287_v52, %v2317_v19 }
 0x132   :  { %950 = vmatpush.msrb.mxu0 %v2369_v50  ;;  %1035 = vmatpush.msrb.mxu1 %v1034_v62  ;;  %v1063_v62 = vsub.f32 %v2511_v39, %v2972_v60  ;;  %v199_v60 = vld [vmem:[#allocation2 + $0x1f0] sm:$0xff] }
 0x133   :  { %1116 = vmatpush.msrb.mxu2 %v2437_v43  ;;  %1167 = vmatpush.msrb.mxu3 %v2393_v63 }
 0x134   :  { %941 = vmatmul.f32.gmra.mxu3 %v2327_v48  ;;  %952 = vmatpush.msrb.mxu0 %v2383_v46  ;;  %v200_v48 = vld [vmem:[#allocation2 + $0x1f8] sm:$0xff]  ;;  %v1064_v31 = vand.u32 4294901760, %v1063_v62  ;;  %v2587_v62 = vand.u32 4294901760, %v199_v60 }
 0x135   :  { %1041 = vmatpush.msrb.mxu1 %v1040_v9  ;;  %1119 = vmatpush.msrb.mxu2 %v2449_v41  ;;  %v1058_v9 = vand.u32 4294901760, %v1057_v13  ;;  %v131_v13 = vmax.f32 %v1975_v51, %v113_v1  ;;  %v1076_v51 = vand.u32 4294901760, %v1075_v21  ;;  %v1087_v1 = vsub.f32 %v2559_v18, %v2977_v37  ;;  %v196_v37 = vld [vmem:[#allocation2 + $0x1d8] sm:$0xff] }
 0x136   :  { %1169 = vmatpush.msrb.mxu3 %v2414_v28  ;;  %954 = vmatpush.msrb.mxu0 %v2393_v63  ;;  %v2606_v21 = vand.u32 4294901760, %v198_v5 }
 0x137   :  { %1047 = vmatpush.msrb.mxu1 %v1046_v12  ;;  %1122 = vmatpush.msrb.mxu2 %v2464_v2  ;;  %v2578_v12 = vand.u32 4294901760, %v200_v48  ;;  %v1088_v33 = vand.u32 4294901760, %v1087_v1  ;;  %v2626_v1 = vand.u32 4294901760, %v196_v37 }
 0x138   :  { %1171 = vmatpush.msrb.mxu3 %v2425_v29  ;;  %782 = vmatmul.f32.gmra.mxu0 %v2342_v34  ;;  %v1070_v34 = vand.u32 4294901760, %v1069_v56  ;;  %v2598_v56 = vand.u32 4294901760, %v131_v13 }
 0x139   :  { %956 = vmatpush.msrb.mxu0 %v2414_v28  ;;  %1053 = vmatpush.msrb.mxu1 %v1052_v30  ;;  %v1081_v30 = vsub.f32 %v2549_v44, %v2975_v17  ;;  %v197_v17 = vld [vmem:[#allocation2 + $0x1e0] sm:$0xff]  ;;  %v2650_v38 = vsub.f32 %v196_v37, %v2626_v1  ;;  %v2664_v37 = vand.u32 4294901760, %v193_v32 }
 0x13a   :  { %1125 = vmatpush.msrb.mxu2 %v2475_v7  ;;  %1173 = vmatpush.msrb.mxu3 %v2439_v49  ;;  %v2615_v19 = vand.u32 4294901760, %v197_v17 }
 0x13b   :  { %958 = vmatpush.msrb.mxu0 %v2425_v29  ;;  %1059 = vmatpush.msrb.mxu1 %v1058_v9  ;;  %v2596_v9 = vsub.f32 %v200_v48, %v2578_v12  ;;  %v2609_v48 = vsub.f32 %v199_v60, %v2587_v62  ;;  %v195_v60 = vld [vmem:[#allocation2 + $0x1d0] sm:$0xff]  ;;  %3019 = vst [vmem:[#allocation11_spill] sm:$0xff] %v2650_v38 }
 0x13c   :  { %1128 = vmatpush.msrb.mxu2 %v2487_v20  ;;  %1175 = vmatpush.msrb.mxu3 %v2454_v54 }
 0x13d   :  { %960 = vmatpush.msrb.mxu0 %v2439_v49  ;;  %1065 = vmatpush.msrb.mxu1 %v1064_v31  ;;  %v1082_v31 = vand.u32 4294901760, %v1081_v30  ;;  %3015 = vst [vmem:[#allocation7_spill] sm:$0xff] %v2609_v48  ;;  %v2980_v52 = vand.u32 4294901760, %v2596_v9  ;;  %v978_v30 = vsub.f32 %v131_v13, %v2598_v56  ;;  %v2986_v8 = vand.u32 4294901760, %v2609_v48 }
 0x13e   :  { %1131 = vmatpush.msrb.mxu2 %v2499_v36  ;;  %1177 = vmatpush.msrb.mxu3 %v2467_v53  ;;  %v2637_v13 = vand.u32 4294901760, %v195_v60 }
 0x13f   :  { %962 = vmatpush.msrb.mxu0 %v2454_v54  ;;  %1071 = vmatpush.msrb.mxu1 %v1070_v34  ;;  %v135_v34 = vmax.f32 %v1972_v40, %v116_v15  ;;  %v1369_v40 = vsub.f32 %v2596_v9, %v2980_v52  ;;  %v2635_v15 = vsub.f32 %v197_v17, %v2615_v19 }
 0x140   :  { %1134 = vmatpush.msrb.mxu2 %v2511_v39  ;;  %1179 = vmatpush.msrb.mxu3 %v2477_v14  ;;  %v1375_v52 = vsub.f32 %v2609_v48, %v2986_v8  ;;  %v2659_v8 = vsub.f32 %v195_v60, %v2637_v13 }
 0x141   :  { %964 = vmatpush.msrb.mxu0 %v2467_v53  ;;  %1077 = vmatpush.msrb.mxu1 %v1076_v51  ;;  %v2624_v51 = vsub.f32 %v198_v5, %v2606_v21  ;;  %3017 = vst [vmem:[#allocation9_spill] sm:$0xff] %v2635_v15  ;;  %v194_v5 = vld [vmem:[#allocation2 + $0x1c8] sm:$0xff]  ;;  %v1370_v24 = vand.u32 4294901760, %v1369_v40 }
 0x142   :  { %1137 = vmatpush.msrb.mxu2 %v2525_v45  ;;  %1181 = vmatpush.msrb.mxu3 %v2489_v27  ;;  %v2654_v26 = vand.u32 4294901760, %v194_v5  ;;  %3020 = vst [vmem:[#allocation12_spill] sm:$0xff] %v2659_v8  ;;  %v1376_v17 = vand.u32 4294901760, %v1375_v52  ;;  %v3022_v52 = vand.u32 4294901760, %v2635_v15 }
 0x143   :  { %966 = vmatpush.msrb.mxu0 %v2477_v14  ;;  %1083 = vmatpush.msrb.mxu1 %v1082_v31  ;;  %3016 = vst [vmem:[#allocation8_spill] sm:$0xff] %v2624_v51  ;;  %v2639_v31 = vand.u32 4294901760, %v135_v34  ;;  %v3021_v16 = vand.u32 4294901760, %v2624_v51 }
 0x144   :  { %1140 = vmatpush.msrb.mxu2 %v2537_v23  ;;  %1183 = vmatpush.msrb.mxu3 %v2501_v55 }
 0x145   :  { %968 = vmatpush.msrb.mxu0 %v2489_v27  ;;  %1089 = vmatpush.msrb.mxu1 %v1088_v33  ;;  %3018 = vst [vmem:[#allocation10_spill] sm:$0xff] %v2639_v31  ;;  %v979_v33 = vand.u32 4294901760, %v978_v30  ;;  %v1381_v60 = vsub.f32 %v2624_v51, %v3021_v16  ;;  %v190_v51 = vld [vmem:[#allocation2 + $0x1a8] sm:$0xff] }
 0x146   :  { %1143 = vmatpush.msrb.mxu2 %v2549_v44  ;;  %1185 = vmatpush.msrb.mxu3 %v2513_v10  ;;  %v191_v44 = vld [vmem:[#allocation2 + $0x1b0] sm:$0xff]  ;;  %v2700_v48 = vand.u32 4294901760, %v190_v51 }
 0x147   :  { %1091 = vmatmul.f32.vlgmr.msrb.gmra.mxu1 %v2598_v56  ;;  %970 = vmatpush.msrb.mxu0 %v2501_v55  ;;  %v980_v40 = vsub.f32 %v978_v30, %v979_v33 }
 0x148   :  { %1277 = vmatpush.msra.mxu1 %v2348_v35  ;;  %1146 = vmatpush.msrb.mxu2 %v2559_v18  ;;  %v986_v35 = vsub.f32 %v135_v34, %v2639_v31  ;;  %v2676_v34 = vand.u32 4294901760, %v192_v0 }
 0x149   :  { %1187 = vmatpush.msrb.mxu3 %v2527_v47  ;;  %1149 = vmatmul.f32.vlgmr.msrb.gmra.mxu2 %v978_v30  ;;  %v1387_v30 = vsub.f32 %v2635_v15, %v3022_v52  ;;  %v3023_v52 = vand.u32 4294901760, %v2650_v38  ;;  %v189_v15 = vld [vmem:[#allocation2 + $0x1a0] sm:$0xff] }
 0x14a   :  { %1279 = vmatpush.msra.mxu1 %v2357_v3  ;;  %1318 = vmatpush.msra.mxu2 %v2578_v12  ;;  %v2674_v3 = vsub.f32 %v194_v5, %v2654_v26  ;;  %v2688_v5 = vand.u32 4294901760, %v191_v44  ;;  %v987_v18 = vand.u32 4294901760, %v986_v35 }
 0x14b   :  { %972 = vmatpush.msrb.mxu0 %v2513_v10  ;;  %1189 = vmatpush.msrb.mxu3 %v2539_v11  ;;  %v1393_v16 = vsub.f32 %v2650_v38, %v3023_v52  ;;  %v188_v52 = vld [vmem:[#allocation2 + $0x198] sm:$0xff]  ;;  %v3025_v38 = vand.u32 4294901760, %v2362_v22 }
 0x14c   :  { %1193 = vmatmul.f32.vlgmr.msrb.gmra.mxu3 %v979_v33  ;;  %1281 = vmatpush.msra.mxu1 %v2369_v50  ;;  %v2686_v50 = vsub.f32 %v193_v32, %v2664_v37  ;;  %v1382_v33 = vand.u32 4294901760, %v1381_v60  ;;  %v2698_v32 = vsub.f32 %v192_v0, %v2676_v34  ;;  %v2711_v0 = vsub.f32 %v191_v44, %v2688_v5 }
 0x14d   :  { %1320 = vmatpush.msra.mxu2 %v2587_v62  ;;  %1371 = vmatpush.msra.mxu3 %v1370_v24  ;;  %v981_v24 = vand.u32 4294901760, %v980_v40  ;;  %v3024_v40 = vand.u32 4294901760, %v2659_v8  ;;  %v3027_v22 = vand.u32 4294901760, %v2674_v3  ;;  %v2723_v44 = vsub.f32 %v190_v51, %v2700_v48 }
 0x14e   :  { %974 = vmatpush.msrb.mxu0 %v2527_v47  ;;  %1283 = vmatpush.msra.mxu1 %v2383_v46  ;;  %v1416_v46 = vand.u32 4294901760, %v2698_v32 }
 0x14f   :  { %1322 = vmatpush.msra.mxu2 %v2606_v21  ;;  %1377 = vmatpush.msra.mxu3 %v1376_v17  ;;  %v1388_v17 = vand.u32 4294901760, %v1387_v30  ;;  %v1399_v60 = vsub.f32 %v2659_v8, %v3024_v40  ;;  %v988_v30 = vsub.f32 %v986_v35, %v987_v18  ;;  %v3026_v40 = vand.u32 4294901760, %v2378_v58 }
 0x150   :  { %976 = vmatpush.msrb.mxu0 %v2539_v11  ;;  %1095 = vmatmul.f32.gmra.mxu1 %v2639_v31  ;;  %v2713_v31 = vand.u32 4294901760, %v189_v15  ;;  %v2725_v8 = vand.u32 4294901760, %v188_v52  ;;  %v3028_v58 = vand.u32 4294901760, %v2391_v4 }
 0x151   :  { %982 = vmatmul.f32.vlgmr.msrb.gmra.mxu0 %v981_v24  ;;  %1285 = vmatpush.msra.mxu1 %v2393_v63  ;;  %v1394_v63 = vand.u32 4294901760, %v1393_v16  ;;  %v187_v24 = vld [vmem:[#allocation2 + $0x190] sm:$0xff]  ;;  %v989_v4 = vand.u32 4294901760, %v988_v30 }
 0x152   :  { %1206 = vmatpush.msra.mxu0 %v3025_v38  ;;  %1324 = vmatpush.msra.mxu2 %v2615_v19  ;;  %v1405_v38 = vsub.f32 %v2674_v3, %v3027_v22  ;;  %v2737_v51 = vand.u32 4294901760, %v187_v24  ;;  %v186_v22 = vld [vmem:[#allocation2 + $0x188] sm:$0xff] }
 0x153   :  { %1383 = vmatpush.msra.mxu3 %v1382_v33  ;;  %1154 = vmatmul.f32.gmra.mxu2 %v986_v35  ;;  %v1400_v35 = vand.u32 4294901760, %v1399_v60  ;;  %v1422_v33 = vand.u32 4294901760, %v2711_v0 }
 0x154   :  { %1210 = vmatpush.msra.mxu0 %v3026_v40  ;;  %1287 = vmatpush.msra.mxu1 %v2414_v28  ;;  %v3029_v28 = vand.u32 4294901760, %v2686_v50  ;;  %v2735_v40 = vsub.f32 %v189_v15, %v2713_v31  ;;  %v1406_v60 = vand.u32 4294901760, %v1405_v38  ;;  %v1417_v15 = vsub.f32 %v2698_v32, %v1416_v46 }
 0x155   :  { %1326 = vmatpush.msra.mxu2 %v2626_v1  ;;  %1389 = vmatpush.msra.mxu3 %v1388_v17  ;;  %v132_v17 = vmax.f32 %v2028_v6, %v2272_v57  ;;  %v185_v6 = vld [vmem:[#allocation2 + $0x180] sm:$0xff]  ;;  %v2754_v57 = vand.u32 4294901760, %v186_v22  ;;  %v2761_v30 = vsub.f32 %v187_v24, %v2737_v51 }
 0x156   :  { %1199 = vmatmul.f32.gmra.mxu3 %v987_v18  ;;  %1214 = vmatpush.msra.mxu0 %v3028_v58  ;;  %v1411_v16 = vsub.f32 %v2686_v50, %v3029_v28  ;;  %v3030_v18 = vand.u32 4294901760, %v2405_v42  ;;  %v1428_v58 = vand.u32 4294901760, %v2723_v44  ;;  %v2750_v28 = vsub.f32 %v188_v52, %v2725_v8 }
 0x157   :  { %1289 = vmatpush.msra.mxu1 %v2425_v29  ;;  %1328 = vmatpush.msra.mxu2 %v2637_v13  ;;  %v1423_v29 = vsub.f32 %v2711_v0, %v1422_v33  ;;  %v2763_v52 = vand.u32 4294901760, %v132_v17  ;;  %v2768_v38 = vand.u32 4294901760, %v185_v6 }
 0x158   :  { %1395 = vmatpush.msra.mxu3 %v1394_v63  ;;  %1218 = vmatpush.msra.mxu0 %v3030_v18  ;;  %v1412_v42 = vand.u32 4294901760, %v1411_v16  ;;  %v1434_v63 = vand.u32 4294901760, %v2735_v40  ;;  %v1429_v16 = vsub.f32 %v2723_v44, %v1428_v58  ;;  %v1440_v24 = vand.u32 4294901760, %v2750_v28 }
 0x159   :  { %1291 = vmatpush.msra.mxu1 %v2439_v49  ;;  %1330 = vmatpush.msra.mxu2 %v2654_v26  ;;  %v3031_v49 = vand.u32 4294901760, %v2412_v59  ;;  %v2779_v59 = vsub.f32 %v186_v22, %v2754_v57 }
 0x15a   :  { %1401 = vmatpush.msra.mxu3 %v1400_v35  ;;  %990 = vmatmul.f32.gmra.mxu0 %v989_v4  ;;  %v1418_v35 = vand.u32 4294901760, %v1417_v15  ;;  %v3032_v4 = vand.u32 4294901760, %v2437_v43  ;;  %v1435_v18 = vsub.f32 %v2735_v40, %v1434_v63  ;;  %v2787_v15 = vsub.f32 %v132_v17, %v2763_v52 }
 0x15b   :  { %1222 = vmatpush.msra.mxu0 %v3031_v49  ;;  %1293 = vmatpush.msra.mxu1 %v2454_v54  ;;  %v1424_v54 = vand.u32 4294901760, %v1423_v29  ;;  %v3033_v43 = vand.u32 4294901760, %v2449_v41  ;;  %v1430_v22 = vand.u32 4294901760, %v1429_v16  ;;  %v136_v17 = vmax.f32 %v2014_v61, %v2322_v25 }
 0x15c   :  { %1332 = vmatpush.msra.mxu2 %v2664_v37  ;;  %1407 = vmatpush.msra.mxu3 %v1406_v60  ;;  %v1446_v60 = vand.u32 4294901760, %v2761_v30  ;;  %v3034_v29 = vand.u32 4294901760, %v2464_v2  ;;  %v1452_v41 = vand.u32 4294901760, %v2779_v59  ;;  %v1351_v49 = vand.u32 4294901760, %v2787_v15 }
 0x15d   :  { %1226 = vmatpush.msra.mxu0 %v3032_v4  ;;  %1295 = vmatpush.msra.mxu1 %v2467_v53  ;;  %v2793_v53 = vsub.f32 %v185_v6, %v2768_v38  ;;  %v2815_v2 = vand.u32 4294901760, %v136_v17  ;;  %v3037_v16 = vand.u32 4294901760, %v2499_v36 }
 0x15e   :  { %1334 = vmatpush.msra.mxu2 %v2676_v34  ;;  %1413 = vmatpush.msra.mxu3 %v1412_v42  ;;  %v1441_v42 = vsub.f32 %v2750_v28, %v1440_v24  ;;  %v1447_v6 = vsub.f32 %v2761_v30, %v1446_v60 }
 0x15f   :  { %1230 = vmatpush.msra.mxu0 %v3033_v43  ;;  %1297 = vmatpush.msra.mxu1 %v2477_v14  ;;  %v1436_v14 = vand.u32 4294901760, %v1435_v18  ;;  %v1458_v61 = vand.u32 4294901760, %v2793_v53  ;;  %v2835_v4 = vsub.f32 %v136_v17, %v2815_v2 }
 0x160   :  { %1336 = vmatpush.msra.mxu2 %v2688_v5  ;;  %1419 = vmatpush.msra.mxu3 %v1418_v35  ;;  %v3035_v35 = vand.u32 4294901760, %v2475_v7  ;;  %v1442_v25 = vand.u32 4294901760, %v1441_v42  ;;  %v1453_v7 = vsub.f32 %v2779_v59, %v1452_v41 }
 0x161   :  { %1234 = vmatpush.msra.mxu0 %v3034_v29  ;;  %1299 = vmatpush.msra.mxu1 %v2489_v27  ;;  %v3036_v27 = vand.u32 4294901760, %v2487_v20  ;;  %v1352_v20 = vsub.f32 %v2787_v15, %v1351_v49  ;;  %v3044_v29 = vld [vmem:[#allocation5_spill] sm:$0xff] }
 0x162   :  { %1338 = vmatpush.msra.mxu2 %v2700_v48  ;;  %1425 = vmatpush.msra.mxu3 %v1424_v54  ;;  %v3038_v54 = vand.u32 4294901760, %v2511_v39  ;;  %v1454_v36 = vand.u32 4294901760, %v1453_v7  ;;  %v1359_v39 = vand.u32 4294901760, %v2835_v4  ;;  %v3051_v7 = vld [vmem:[#allocation9_spill] sm:$0xff] }
 0x163   :  { %1238 = vmatpush.msra.mxu0 %v3035_v35  ;;  %1301 = vmatpush.msra.mxu1 %v2501_v55  ;;  %v1448_v55 = vand.u32 4294901760, %v1447_v6  ;;  %v1353_v18 = vand.u32 4294901760, %v1352_v20  ;;  %v3048_v35 = vld [vmem:[#allocation6_spill] sm:$0xff] }
 0x164   :  { %1340 = vmatpush.msra.mxu2 %v2713_v31  ;;  %1431 = vmatpush.msra.mxu3 %v1430_v22  ;;  %v3041_v22 = vand.u32 4294901760, %v2537_v23  ;;  %v1360_v17 = vsub.f32 %v2835_v4, %v1359_v39  ;;  %v3046_v23 = vld [vmem:[#allocation8_spill] sm:$0xff] }
 0x165   :  { %1242 = vmatpush.msra.mxu0 %v3036_v27  ;;  %1303 = vmatpush.msra.mxu1 %v2513_v10  ;;  %v1459_v10 = vsub.f32 %v2793_v53, %v1458_v61  ;;  %v3047_v6 = vand.u32 4294901760, %v3046_v23  ;;  %v3050_v27 = vld [vmem:[#allocation10_spill] sm:$0xff] }
 0x166   :  { %1342 = vmatpush.msra.mxu2 %v2725_v8  ;;  %1437 = vmatpush.msra.mxu3 %v1436_v14  ;;  %v3045_v14 = vand.u32 4294901760, %v3044_v29 }
 0x167   :  { %1246 = vmatpush.msra.mxu0 %v3037_v16  ;;  %1305 = vmatpush.msra.mxu1 %v2527_v47  ;;  %v3039_v47 = vand.u32 4294901760, %v2525_v45  ;;  %v1460_v43 = vand.u32 4294901760, %v1459_v10  ;;  %v3042_v45 = vld [vmem:[#allocation7_spill] sm:$0xff] }
 0x168   :  { %1344 = vmatpush.msra.mxu2 %v2737_v51  ;;  %1443 = vmatpush.msra.mxu3 %v1442_v25  ;;  %v3043_v42 = vand.u32 4294901760, %v3042_v45  ;;  %v3049_v25 = vand.u32 4294901760, %v3048_v35 }
 0x169   :  { %1250 = vmatpush.msra.mxu0 %v3038_v54  ;;  %1307 = vmatpush.msra.mxu1 %v2539_v11  ;;  %v3040_v11 = vand.u32 4294901760, %v2596_v9 }
 0x16a   :  { %1346 = vmatpush.msra.mxu2 %v2754_v57  ;;  %1449 = vmatpush.msra.mxu3 %v1448_v55  ;;  %v3052_v55 = vand.u32 4294901760, %v3051_v7 }
 0x16b   :  { %1309 = vmatmul.f32.vlgmr.msra.gmra.mxu1 %v2598_v56  ;;  %1254 = vmatpush.msra.mxu0 %v3039_v47 }
 0x16c   :  { %1531 = vmatpush.msrb.mxu1 %v2578_v12  ;;  %1348 = vmatpush.msra.mxu2 %v2768_v38 }
 0x16d   :  { %1455 = vmatpush.msra.mxu3 %v1454_v36  ;;  %1354 = vmatmul.f32.vlgmr.msra.gmra.mxu2 %v1353_v18 }
 0x16e   :  { %1533 = vmatpush.msrb.mxu1 %v2587_v62  ;;  %1578 = vmatpush.msrb.mxu2 %v3040_v11 }
 0x16f   :  { %1258 = vmatpush.msra.mxu0 %v3041_v22  ;;  %1461 = vmatpush.msra.mxu3 %v1460_v43 }
 0x170   :  { %1463 = vmatmul.f32.vlgmr.msra.gmra.mxu3 %v2763_v52  ;;  %1535 = vmatpush.msrb.mxu1 %v2606_v21 }
 0x171   :  { %1582 = vmatpush.msrb.mxu2 %v3043_v42  ;;  %1649 = vmatpush.msrb.mxu3 %v2578_v12  ;;  %v1361_v12 = vand.u32 4294901760, %v1360_v17 }
 0x172   :  { %1262 = vmatpush.msra.mxu0 %v3045_v14  ;;  %1537 = vmatpush.msrb.mxu1 %v2615_v19 }
 0x173   :  { %1586 = vmatpush.msrb.mxu2 %v3047_v6  ;;  %1651 = vmatpush.msrb.mxu3 %v2587_v62  ;;  %v3053_v62 = vld [vmem:[#allocation11_spill] sm:$0xff] }
 0x174   :  { %1266 = vmatpush.msra.mxu0 %v3049_v25  ;;  %1313 = vmatmul.f32.gmra.mxu1 %v3050_v27  ;;  %v3054_v16 = vand.u32 4294901760, %v3053_v62 }
 0x175   :  { %1268 = vmatmul.f32.vlgmr.msra.gmra.mxu0 %v2598_v56  ;;  %1539 = vmatpush.msrb.mxu1 %v2626_v1 }
 0x176   :  { %1473 = vmatpush.msrb.mxu0 %v2596_v9  ;;  %1590 = vmatpush.msrb.mxu2 %v3052_v55  ;;  %v3055_v9 = vld [vmem:[#allocation12_spill] sm:$0xff] }
 0x177   :  { %1653 = vmatpush.msrb.mxu3 %v2606_v21  ;;  %1362 = vmatmul.f32.gmra.mxu2 %v1361_v12  ;;  %v3056_v56 = vand.u32 4294901760, %v3055_v9  ;;  %v3057_v21 = vand.u32 4294901760, %v2674_v3 }
 0x178   :  { %1476 = vmatpush.msrb.mxu0 %v3042_v45  ;;  %1541 = vmatpush.msrb.mxu1 %v2637_v13 }
 0x179   :  { %1594 = vmatpush.msrb.mxu2 %v3054_v16  ;;  %1655 = vmatpush.msrb.mxu3 %v2615_v19  ;;  %v3058_v19 = vand.u32 4294901760, %v2686_v50 }
 0x17a   :  { %1467 = vmatmul.f32.gmra.mxu3 %v2815_v2  ;;  %1479 = vmatpush.msrb.mxu0 %v3046_v23 }
 0x17b   :  { %1543 = vmatpush.msrb.mxu1 %v2654_v26  ;;  %1598 = vmatpush.msrb.mxu2 %v3056_v56 }
 0x17c   :  { %1657 = vmatpush.msrb.mxu3 %v2626_v1  ;;  %1482 = vmatpush.msrb.mxu0 %v3051_v7 }
 0x17d   :  { %1545 = vmatpush.msrb.mxu1 %v2664_v37  ;;  %1602 = vmatpush.msrb.mxu2 %v3057_v21 }
 0x17e   :  { %1659 = vmatpush.msrb.mxu3 %v2637_v13  ;;  %1272 = vmatmul.f32.gmra.mxu0 %v3050_v27 }
 0x17f   :  { %1485 = vmatpush.msrb.mxu0 %v3053_v62  ;;  %1547 = vmatpush.msrb.mxu1 %v2676_v34 }
 0x180   :  { %1606 = vmatpush.msrb.mxu2 %v3058_v19  ;;  %1661 = vmatpush.msrb.mxu3 %v2654_v26  ;;  %v348_v26 = vpop.f32.mrf.mxu1 }
 0x181   :  { %1488 = vmatpush.msrb.mxu0 %v3055_v9  ;;  %1549 = vmatpush.msrb.mxu1 %v2688_v5 }
 0x182   :  { %1610 = vmatpush.msrb.mxu2 %v1416_v46  ;;  %1663 = vmatpush.msrb.mxu3 %v2664_v37 }
 0x183   :  { %1491 = vmatpush.msrb.mxu0 %v2674_v3  ;;  %1551 = vmatpush.msrb.mxu1 %v2700_v48  ;;  %v450_v1 = vpop.f32.mrf.mxu3 }
 0x184   :  { %1614 = vmatpush.msrb.mxu2 %v1422_v33  ;;  %1665 = vmatpush.msrb.mxu3 %v2676_v34 }
 0x185   :  { %1494 = vmatpush.msrb.mxu0 %v2686_v50  ;;  %1553 = vmatpush.msrb.mxu1 %v2713_v31 }
 0x186   :  { %1618 = vmatpush.msrb.mxu2 %v1428_v58  ;;  %1667 = vmatpush.msrb.mxu3 %v2688_v5 }
 0x187   :  { %1497 = vmatpush.msrb.mxu0 %v2698_v32  ;;  %1555 = vmatpush.msrb.mxu1 %v2725_v8 }
 0x188   :  { %1622 = vmatpush.msrb.mxu2 %v1434_v63  ;;  %1669 = vmatpush.msrb.mxu3 %v2700_v48  ;;  %v406_v48 = vpop.f32.mrf.mxu2  ;;  %v352_v13 = vpop.f32.mrf.mxu1 }
 0x189   :  { %1500 = vmatpush.msrb.mxu0 %v2711_v0  ;;  %1557 = vmatpush.msrb.mxu1 %v2737_v51 }
 0x18a   :  { %1626 = vmatpush.msrb.mxu2 %v1440_v24  ;;  %1671 = vmatpush.msrb.mxu3 %v2713_v31 }
 0x18b   :  { %1503 = vmatpush.msrb.mxu0 %v2723_v44  ;;  %1559 = vmatpush.msrb.mxu1 %v2754_v57 }
 0x18c   :  { %1630 = vmatpush.msrb.mxu2 %v1446_v60  ;;  %1673 = vmatpush.msrb.mxu3 %v2725_v8  ;;  %v239_v8 = vpop.f32.mrf.mxu0 }
 0x18d   :  { %1506 = vmatpush.msrb.mxu0 %v2735_v40  ;;  %1561 = vmatpush.msrb.mxu1 %v2768_v38  ;;  %v456_v3 = vpop.f32.mrf.mxu3  ;;  %v349_v32 = vadd.f32 %v348_v26, %v239_v8 }
 0x18e   :  { %1634 = vmatpush.msrb.mxu2 %v1452_v41  ;;  %1675 = vmatpush.msrb.mxu3 %v2737_v51 }
 0x18f   :  { %1565 = vmatmul.f32.vlgmr.msrb.gmra.mxu1 %v1351_v49  ;;  %1509 = vmatpush.msrb.mxu0 %v2750_v28  ;;  %v407_v40 = vadd.f32 %v406_v48, %v349_v32 }
 0x190   :  { %1638 = vmatpush.msrb.mxu2 %v1458_v61  ;;  %1677 = vmatpush.msrb.mxu3 %v2754_v57  ;;  %v411_v37 = vpop.f32.mrf.mxu2  ;;  %v566_v34 = vpop.f32.mrf.mxu1 }
 0x191   :  { %1640 = vmatmul.f32.vlgmr.msrb.gmra.mxu2 %v2763_v52  ;;  %1512 = vmatpush.msrb.mxu0 %v2761_v30  ;;  %v451_v58 = vadd.f32 %v450_v1, %v407_v40 }
 0x192   :  { %1679 = vmatpush.msrb.mxu3 %v2768_v38 }
 0x193   :  { %1681 = vmatmul.f32.vlgmr.msrb.gmra.mxu3 %v2763_v52  ;;  %1515 = vmatpush.msrb.mxu0 %v2779_v59 }
 0x194   :  { %v247_v31 = vpop.f32.mrf.mxu0 }
 0x195   :  { %1518 = vmatpush.msrb.mxu0 %v2793_v53  ;;  %v353_v28 = vadd.f32 %v352_v13, %v247_v31 }
 0x196   :  { %1521 = vmatmul.f32.vlgmr.msrb.gmra.mxu0 %v2787_v15 }
 0x197   :  { %1571 = vmatmul.f32.gmra.mxu1 %v1359_v39  ;;  %v720_v46 = vpop.f32.mrf.mxu3  ;;  %v412_v52 = vadd.f32 %v411_v37, %v353_v28 }
 0x198   :  { %v611_v5 = vpop.f32.mrf.mxu2  ;;  %v570_v0 = vpop.f32.mrf.mxu1 }
 0x199   :  { %1644 = vmatmul.f32.gmra.mxu2 %v2815_v2  ;;  %v457_v60 = vadd.f32 %v456_v3, %v412_v52 }
 0x19b   :  { %1685 = vmatmul.f32.gmra.mxu3 %v2815_v2 }
 0x19c   :  { %v525_v50 = vpop.f32.mrf.mxu0 }
 0x19d   :  { %v526_v57 = vadd.f32 %v525_v50, %v451_v58 }
 0x19e   :  { %1526 = vmatmul.f32.gmra.mxu0 %v2835_v4 }
 0x19f   :  { %v567_v24 = vadd.f32 %v566_v34, %v526_v57 }
 0x1a0   :  { %v619_v33 = vpop.f32.mrf.mxu2 }
 0x1a1   :  { %v724_v51 = vpop.f32.mrf.mxu3  ;;  %v822_v63 = vpop.f32.mrf.mxu1  ;;  %v612_v15 = vadd.f32 %v611_v5, %v567_v24 }
 0x1a3   :  { %v721_v61 = vadd.f32 %v720_v46, %v612_v15 }
 0x1a4   :  { %v529_v44 = vpop.f32.mrf.mxu0 }
 0x1a5   :  { %v530_v53 = vadd.f32 %v529_v44, %v457_v60 }
 0x1a7   :  { %v571_v2 = vadd.f32 %v570_v0, %v530_v53 }
 0x1a9   :  { %v620_v54 = vadd.f32 %v619_v33, %v571_v2 }
 0x1aa   :  { %v897_v38 = vpop.f32.mrf.mxu2 }
 0x1ab   :  { %v828_v41 = vpop.f32.mrf.mxu1  ;;  %v725_v43 = vadd.f32 %v724_v51, %v620_v54 }
 0x1ac   :  { %v778_v30 = vpop.f32.mrf.mxu0 }
 0x1ad   :  { %v938_v59 = vpop.f32.mrf.mxu3  ;;  %v779_v10 = vadd.f32 %v778_v30, %v721_v61 }
 0x1af   :  { %v823_v36 = vadd.f32 %v822_v63, %v779_v10 }
 0x1b1   :  { %v898_v11 = vadd.f32 %v897_v38, %v823_v36 }
 0x1b3   :  { %v939_v42 = vadd.f32 %v938_v59, %v898_v11 }
 0x1b4   :  { %v901_v20 = vpop.f32.mrf.mxu2 }
 0x1b5   :  { %v783_v49 = vpop.f32.mrf.mxu0 }
 0x1b6   :  { %v784_v22 = vadd.f32 %v783_v49, %v725_v43 }
 0x1b7   :  { %v942_v4 = vpop.f32.mrf.mxu3 }
 0x1b8   :  { %v829_v17 = vadd.f32 %v828_v41, %v784_v22 }
 0x1ba   :  { %v902_v6 = vadd.f32 %v901_v20, %v829_v17 }
 0x1bc   :  { %v943_v12 = vadd.f32 %v942_v4, %v902_v6 }
 0x1c4   :  { %v1092_v47 = vpop.f32.mrf.mxu1 }
 0x1cc   :  { %v1150_v39 = vpop.f32.mrf.mxu2 }
 0x1cd   :  { %v1096_v14 = vpop.f32.mrf.mxu1 }
 0x1ce   :  { %v983_v18 = vpop.f32.mrf.mxu0 }
 0x1cf   :  { %v1194_v45 = vpop.f32.mrf.mxu3  ;;  %v984_v29 = vadd.f32 %v983_v18, %v939_v42 }
 0x1d1   :  { %v1093_v25 = vadd.f32 %v1092_v47, %v984_v29 }
 0x1d3   :  { %v1151_v7 = vadd.f32 %v1150_v39, %v1093_v25 }
 0x1d5   :  { %v1195_v56 = vadd.f32 %v1194_v45, %v1151_v7 }
 0x1d6   :  { %v1155_v35 = vpop.f32.mrf.mxu2 }
 0x1d7   :  { %v991_v23 = vpop.f32.mrf.mxu0 }
 0x1d8   :  { %v992_v55 = vadd.f32 %v991_v23, %v943_v12 }
 0x1d9   :  { %v1200_v27 = vpop.f32.mrf.mxu3 }
 0x1da   :  { %v1097_v21 = vadd.f32 %v1096_v14, %v992_v55 }
 0x1dc   :  { %v1156_v8 = vadd.f32 %v1155_v35, %v1097_v21 }
 0x1de   :  { %v1201_v31 = vadd.f32 %v1200_v27, %v1156_v8 }
 0x1e8   :  { %v1310_v62 = vpop.f32.mrf.mxu1 }
 0x1f0   :  { %v1355_v9 = vpop.f32.mrf.mxu2 }
 0x1f1   :  { %v1314_v1 = vpop.f32.mrf.mxu1 }
 0x1f2   :  { %v1269_v16 = vpop.f32.mrf.mxu0 }
 0x1f3   :  { %v1464_v19 = vpop.f32.mrf.mxu3  ;;  %v1270_v26 = vadd.f32 %v1269_v16, %v1195_v56 }
 0x1f5   :  { %v1311_v48 = vadd.f32 %v1310_v62, %v1270_v26 }
 0x1f7   :  { %v1356_v3 = vadd.f32 %v1355_v9, %v1311_v48 }
 0x1f9   :  { %v1465_v5 = vadd.f32 %v1464_v19, %v1356_v3 }
 0x1fa   :  { %v1363_v37 = vpop.f32.mrf.mxu2 }
 0x1fb   :  { %v1273_v13 = vpop.f32.mrf.mxu0 }
 0x1fc   :  { %v1274_v34 = vadd.f32 %v1273_v13, %v1201_v31 }
 0x1fd   :  { %v1468_v50 = vpop.f32.mrf.mxu3 }
 0x1fe   :  { %v1315_v46 = vadd.f32 %v1314_v1, %v1274_v34 }
 0x200   :  { %v1364_v40 = vadd.f32 %v1363_v37, %v1315_v46 }
 0x202   :  { %v1469_v57 = vadd.f32 %v1468_v50, %v1364_v40 }
 0x20c   :  { %v1566_v32 = vpop.f32.mrf.mxu1 }
 0x213   :  { %v1522_v0 = vpop.f32.mrf.mxu0 }
 0x214   :  { %v1523_v44 = vadd.f32 %v1522_v0, %v1465_v5  ;;  %v1641_v33 = vpop.f32.mrf.mxu2  ;;  %v1572_v38 = vpop.f32.mrf.mxu1 }
 0x216   :  { %v1567_v51 = vadd.f32 %v1566_v32, %v1523_v44  ;;  %v1682_v58 = vpop.f32.mrf.mxu3 }
 0x218   :  { %v1642_v28 = vadd.f32 %v1641_v33, %v1567_v51 }
 0x21a   :  { %v1683_v63 = vadd.f32 %v1682_v58, %v1642_v28 }
 0x21b   :  { %v1527_v30 = vpop.f32.mrf.mxu0 }
 0x21c   :  { %1689 = vst [vmem:[%s2958_s2] sm:$0xff] %v1683_v63  ;;  %v1528_v52 = vadd.f32 %v1527_v30, %v1469_v57  ;;  %v1645_v59 = vpop.f32.mrf.mxu2 }
 0x21e   :  { %v1573_v24 = vadd.f32 %v1572_v38, %v1528_v52  ;;  %v1686_v15 = vpop.f32.mrf.mxu3 }
 0x220   :  { %v1646_v60 = vadd.f32 %v1645_v59, %v1573_v24 }
 0x222   :  { %v1687_v53 = vadd.f32 %v1686_v15, %v1646_v60 }
 0x224   :  { %1690 = vst [vmem:[%s2958_s2 + $0x8] sm:$0xf] %v1687_v53 }
 0x225   :  { %1695 = vsyncpa [#allocation3], 1 }

</bundles_post_ra>
